<compile_context>
chip_gen: v7x
topology: tpu7x:2x2x1
jax: 0.10.0
libtpu: 0.0.40
codegen_flags: <defaults>
</compile_context>

<pallas_src>
import jax
import jax.numpy as jnp
import numpy as np
from jax import lax
from jax.experimental import pallas as pl
from jax.experimental.pallas import tpu as pltpu

_LOG2 = float(np.log(2.0))
_LANE = 128
_SUBLANE = 8


def _round_up(x, m):
    return ((x + m - 1) // m) * m


def _cal_total_kernel(batch_ref, v_ref, w1t_ref, b1_ref, w2t_ref, b2_ref, out_ref):
    """One row tile of the fused MLP + segment sum, feature-transposed layout.

    Shapes inside the kernel (T = tile_rows):
      batch_ref : [1, T]     int32   segment id per row (-1 for padding rows)
      v_ref     : [T, H]     x_dtype node features
      w1t_ref   : [H2p, H]   x_dtype W1^T   (H2p = hidden//2 rounded up to 8)
      b1_ref    : [H2p, 1]   f32
      w2t_ref   : [C, H2p]   f32     W2^T
      b2_ref    : [C, 1]     f32     b2 - log(2) * colsum(W2)  (shift folded in)
      out_ref   : [Bp, C]    f32     resident per-core accumulator
    """
    # Output block is resident across this core's row-tile (reduction) axis.
    @pl.when(pl.program_id(1) == 0)
    def _():
        out_ref[...] = jnp.zeros_like(out_ref)

    # h^T = W1^T @ v^T  — contract the feature axis (last dim of both operands),
    # so hidden lands on the sublane axis at its real width (no 16->128 lane
    # padding -> 8x less EUP/VPU work in the softplus below).
    h = lax.dot_general(
        w1t_ref[...], v_ref[...],
        dimension_numbers=(((1,), (1,)), ((), ())),
        preferred_element_type=jnp.float32)                       # [H2p, T] f32
    h = h + b1_ref[...]                                           # lane-broadcast bias
    # Numerically stable softplus; the "- log(2)" shift is folded into b2'.
    h = jnp.maximum(h, 0.0) + jnp.log(1.0 + jnp.exp(-jnp.abs(h)))

    # y^T = W2^T @ softplus(h)^T + b2'
    y = jnp.dot(w2t_ref[...], h, preferred_element_type=jnp.float32)   # [C, T] f32
    y = y + b2_ref[...]

    # Segment sum as a single one-hot matmul:
    #   out[b, c] += sum_t [batch[t] == b] * y[c, t]
    # Segment ids stay lane-dense; padded rows carry id -1 and never match.
    # TODO(synk): for very large num_segments, scalar-prefetch per-tile segment
    # windows (sorted batch) so the one-hot / accumulator is O(window), not O(B).
    idx = batch_ref[...]                                           # [1, T] int32
    seg = lax.broadcasted_iota(jnp.int32, (out_ref.shape[0], idx.shape[1]), 0)
    onehot = (idx == seg).astype(jnp.float32)                      # [Bp, T]
    out_ref[...] += lax.dot_general(
        onehot, y, dimension_numbers=(((1,), (1,)), ((), ())),
        preferred_element_type=jnp.float32)                        # [Bp, C]


def cal_total_forward(v, batch, params, num_segments, *,
                      tile_rows=2048, num_cores=2, x_dtype=jnp.bfloat16):
    """Pallas implementation of cal_total.forward.

    v:            [N, hidden_channels] float32 per-node features
    batch:        [N] int32 segment (graph) id per row, values in [0, num_segments)
    params:       dict with w1 [H, H//2], b1 [H//2], w2 [H//2, Cout], b2 [Cout]
                  (math orientation: y = x @ W + b)
    num_segments: number of graphs (output rows)
    tile_rows:    rows of v per grid step (sweep 1024-4096+; must be mult. of 128)
    num_cores:    leading "parallel" grid axis (2 = megacore split on v7x)
    x_dtype:      dtype of the streamed v / W1 (bf16 halves HBM traffic)
    """
    assert tile_rows % _LANE == 0, "tile_rows must be a multiple of 128"
    N, H = v.shape
    H2 = params["w1"].shape[1]
    Cout = params["w2"].shape[1]

    H2_p = _round_up(H2, _SUBLANE)
    B_pad = _round_up(num_segments, _SUBLANE)
    N_pad = _round_up(N, num_cores * tile_rows)
    tiles_per_core = N_pad // (num_cores * tile_rows)
    tpc = tiles_per_core  # closed over by the index maps (Python int)

    # Pad / cast inputs and parameters.  All zero padding is exactly inert:
    # padded hidden rows of W1^T feed zero columns of W2^T, and padded data
    # rows carry segment id -1 so they never match the segment iota.
    v_pad = jnp.zeros((N_pad, H), x_dtype).at[:N].set(v.astype(x_dtype))
    batch_pad = jnp.full((1, N_pad), -1, jnp.int32).at[0, :N].set(batch.astype(jnp.int32))

    w1_f32 = jnp.asarray(params["w1"], jnp.float32)                # [H, H2]
    w2_f32 = jnp.asarray(params["w2"], jnp.float32)                # [H2, Cout]
    w1t = (jnp.zeros((H2_p, H), jnp.float32).at[:H2, :].set(w1_f32.T)).astype(x_dtype)
    w2t = jnp.zeros((Cout, H2_p), jnp.float32).at[:, :H2].set(w2_f32.T)
    b1 = jnp.zeros((H2_p, 1), jnp.float32).at[:H2, 0].set(
        jnp.asarray(params["b1"], jnp.float32).reshape(-1))
    # Fold the ShiftedSoftplus shift:  (sp(h)-log2) @ W2 + b2 == sp(h) @ W2 + b2'
    b2 = (jnp.asarray(params["b2"], jnp.float32).reshape(-1)
          - _LOG2 * jnp.sum(w2_f32, axis=0)).reshape(Cout, 1)

    out_parts = pl.pallas_call(
        _cal_total_kernel,
        out_shape=jax.ShapeDtypeStruct((num_cores, B_pad, Cout), jnp.float32),
        grid_spec=pltpu.PrefetchScalarGridSpec(
            num_scalar_prefetch=0,
            grid=(num_cores, tiles_per_core),
            in_specs=[
                pl.BlockSpec((1, tile_rows), lambda c, t: (0, c * tpc + t)),   # ids (lane-dense)
                pl.BlockSpec((tile_rows, H), lambda c, t: (c * tpc + t, 0)),   # v tile
                pl.BlockSpec((H2_p, H), lambda c, t: (0, 0)),                  # W1^T
                pl.BlockSpec((H2_p, 1), lambda c, t: (0, 0)),                  # b1
                pl.BlockSpec((Cout, H2_p), lambda c, t: (0, 0)),               # W2^T
                pl.BlockSpec((Cout, 1), lambda c, t: (0, 0)),                  # b2'
            ],
            # One resident accumulator per core; leading axis squeezed away.
            out_specs=pl.BlockSpec((None, B_pad, Cout), lambda c, t: (c, 0, 0)),
        ),
        compiler_params=pltpu.CompilerParams(
            # core axis parallel (both v7x TensorCores); row tiles are the
            # reduction axis of the resident accumulator.
            dimension_semantics=("parallel", "arbitrary"),
            # Raise scoped VMEM so big tiles also compile on v5e (16 MiB default).
            vmem_limit_bytes=32 * 1024 * 1024,
        ),
    )(batch_pad, v_pad, w1t, b1, w2t, b2)

    # Sum the per-core partial segment sums and drop padding.
    return jnp.sum(out_parts, axis=0)[:num_segments]


def reference_forward(v, batch, params, num_segments):
    """Pure-JAX reference mirroring the PyTorch module."""
    h = v @ params["w1"] + params["b1"].reshape(1, -1)
    h = jax.nn.softplus(h) - _LOG2
    y = h @ params["w2"] + params["b2"].reshape(1, -1)
    return jnp.zeros((num_segments, y.shape[1]), jnp.float32).at[batch].add(y)


if __name__ == "__main__":
    # Small shapes consistent with the module.
    hidden_channels, out_channels = 32, 16
    H2 = hidden_channels // 2
    N = 500            # total nodes across graphs
    B = 6              # number of graphs (segments)

    key = jax.random.PRNGKey(0)
    k = jax.random.split(key, 6)

    v = jax.random.normal(k[0], (N, hidden_channels), jnp.float32)
    batch = jax.random.randint(k[1], (N,), 0, B, jnp.int32)

    params = {
        "w1": jax.random.normal(k[2], (hidden_channels, H2), jnp.float32) * 0.1,
        "b1": jax.random.normal(k[3], (H2,), jnp.float32) * 0.1,
        "w2": jax.random.normal(k[4], (H2, out_channels), jnp.float32) * 0.1,
        "b2": jax.random.normal(k[5], (out_channels,), jnp.float32) * 0.1,
    }

    ref = reference_forward(v, batch, params, B)

    # Exact-path check (f32 streamed activations / weights).
    out_f32 = cal_total_forward(v, batch, params, B, x_dtype=jnp.float32)
    out_f32 = jax.block_until_ready(out_f32)
    np.testing.assert_allclose(np.asarray(out_f32), np.asarray(ref),
                               rtol=1e-5, atol=1e-4)

    # Fast path: bf16 v / W1 stream (halves HBM traffic), f32 accumulation.
    out_bf16 = cal_total_forward(v, batch, params, B)
    out_bf16 = jax.block_until_ready(out_bf16)
    np.testing.assert_allclose(np.asarray(out_bf16), np.asarray(ref),
                               rtol=2e-2, atol=2e-2)

    print("KERNEL_OK")
</pallas_src>

<mosaic_0001>
module attributes {stable_mosaic.version = 11 : i64} {
  func.func @_cal_total_kernel(%arg0: i32, %arg1: i32, %arg2: memref<1x2048xi32, #tpu.memory_space<vmem>>, %arg3: memref<2048x32xf32, #tpu.memory_space<vmem>>, %arg4: memref<16x32xf32, #tpu.memory_space<vmem>>, %arg5: memref<16x1xf32, #tpu.memory_space<vmem>>, %arg6: memref<16x16xf32, #tpu.memory_space<vmem>>, %arg7: memref<16x1xf32, #tpu.memory_space<vmem>>, %arg8: memref<1x8x16xf32, #tpu.memory_space<vmem>>) attributes {dimension_semantics = [#tpu.dimension_semantics<parallel>, #tpu.dimension_semantics<arbitrary>], iteration_bounds = array<i64: 2, 1>, scalar_prefetch = 0 : i64, scratch_operands = 0 : i64, tpu.core_type = #tpu.core_type<tc>, window_params = [{transform_indices = @transform_0, window_bounds = array<i64: 1, 2048>}, {transform_indices = @transform_1, window_bounds = array<i64: 2048, 32>}, {pipeline_mode = #tpu.pipeline_mode<synchronous>, transform_indices = @transform_2, window_bounds = array<i64: 16, 32>}, {pipeline_mode = #tpu.pipeline_mode<synchronous>, transform_indices = @transform_3, window_bounds = array<i64: 16, 1>}, {pipeline_mode = #tpu.pipeline_mode<synchronous>, transform_indices = @transform_4, window_bounds = array<i64: 16, 16>}, {pipeline_mode = #tpu.pipeline_mode<synchronous>, transform_indices = @transform_5, window_bounds = array<i64: 16, 1>}, {transform_indices = @transform_6, window_bounds = array<i64: 1, 8, 16>}]} {
    %c0_i32 = arith.constant 0 : i32
    %0 = arith.cmpi eq, %arg1, %c0_i32 : i32
    %1 = arith.extui %0 : i1 to i32
    %c0_i32_0 = arith.constant 0 : i32
    %2 = arith.cmpi ne, %1, %c0_i32_0 : i32
    scf.if %2 {
      %cst_23 = arith.constant 0.000000e+00 : f32
      %37 = vector.broadcast %cst_23 : f32 to vector<8x16xf32>
      %c0_24 = arith.constant 0 : index
      %c0_25 = arith.constant 0 : index
      %c0_26 = arith.constant 0 : index
      %38 = vector.load %arg8[%c0_24, %c0_25, %c0_26] : memref<1x8x16xf32, #tpu.memory_space<vmem>>, vector<1x8x16xf32>
      %39 = vector.shape_cast %38 : vector<1x8x16xf32> to vector<8x16xf32>
      %40 = vector.shape_cast %37 : vector<8x16xf32> to vector<1x8x16xf32>
      tpu.vector_store %arg8[%c0_24, %c0_25, %c0_26], %40 {strides = array<i32>} : memref<1x8x16xf32, #tpu.memory_space<vmem>>, vector<1x8x16xf32>,
    } else {
    }
    %c0 = arith.constant 0 : index
    %c0_1 = arith.constant 0 : index
    %3 = vector.load %arg4[%c0, %c0_1] : memref<16x32xf32, #tpu.memory_space<vmem>>, vector<16x32xf32>
    %c0_2 = arith.constant 0 : index
    %c0_3 = arith.constant 0 : index
    %4 = vector.load %arg3[%c0_2, %c0_3] : memref<2048x32xf32, #tpu.memory_space<vmem>>, vector<2048x32xf32>
    %cst = arith.constant dense<0.000000e+00> : vector<16x2048xf32>
    %5 = tpu.matmul %3, %4, %cst {dimension_numbers = #tpu.dot_dimension_numbers<[1], [1], [0], [0], [0, 0, 1, 0], [], []>} : vector<16x32xf32>, vector<2048x32xf32>, vector<16x2048xf32> -> vector<16x2048xf32>
    %c0_4 = arith.constant 0 : index
    %c0_5 = arith.constant 0 : index
    %6 = vector.load %arg5[%c0_4, %c0_5] : memref<16x1xf32, #tpu.memory_space<vmem>>, vector<16x1xf32>
    %7 = vector.broadcast %6 : vector<16x1xf32> to vector<16x2048xf32>
    %8 = arith.addf %5, %7 : vector<16x2048xf32>
    %cst_6 = arith.constant 0.000000e+00 : f32
    %9 = vector.broadcast %cst_6 : f32 to vector<16x2048xf32>
    %10 = arith.maximumf %8, %9 : vector<16x2048xf32>
    %11 = math.absf %8 : vector<16x2048xf32>
    %cst_7 = arith.constant 0.000000e+00 : f32
    %12 = vector.broadcast %cst_7 : f32 to vector<16x2048xf32>
    %13 = arith.subf %12, %11 : vector<16x2048xf32>
    %14 = math.exp %13 : vector<16x2048xf32>
    %cst_8 = arith.constant 1.000000e+00 : f32
    %15 = vector.broadcast %cst_8 : f32 to vector<16x2048xf32>
    %16 = arith.addf %15, %14 : vector<16x2048xf32>
    %17 = math.log %16 : vector<16x2048xf32>
    %18 = arith.addf %10, %17 : vector<16x2048xf32>
    %c0_9 = arith.constant 0 : index
    %c0_10 = arith.constant 0 : index
    %19 = vector.load %arg6[%c0_9, %c0_10] : memref<16x16xf32, #tpu.memory_space<vmem>>, vector<16x16xf32>
    %cst_11 = arith.constant dense<0.000000e+00> : vector<16x2048xf32>
    %20 = tpu.matmul %19, %18, %cst_11 {dimension_numbers = #tpu.dot_dimension_numbers<[1], [0], [0], [1], [0, 0, 1, 1], [], []>} : vector<16x16xf32>, vector<16x2048xf32>, vector<16x2048xf32> -> vector<16x2048xf32>
    %c0_12 = arith.constant 0 : index
    %c0_13 = arith.constant 0 : index
    %21 = vector.load %arg7[%c0_12, %c0_13] : memref<16x1xf32, #tpu.memory_space<vmem>>, vector<16x1xf32>
    %22 = vector.broadcast %21 : vector<16x1xf32> to vector<16x2048xf32>
    %23 = arith.addf %20, %22 : vector<16x2048xf32>
    %c0_14 = arith.constant 0 : index
    %c0_15 = arith.constant 0 : index
    %24 = vector.load %arg2[%c0_14, %c0_15] : memref<1x2048xi32, #tpu.memory_space<vmem>>, vector<1x2048xi32>
    %25 = tpu.iota {dimensions = array<i32: 0>} : vector<8x2048xi32>
    %26 = vector.broadcast %24 : vector<1x2048xi32> to vector<8x2048xi32>
    %27 = arith.cmpi eq, %26, %25 : vector<8x2048xi32>
    %28 = arith.extui %27 : vector<8x2048xi1> to vector<8x2048xi32>
    %29 = arith.sitofp %28 : vector<8x2048xi32> to vector<8x2048xf32>
    %c0_16 = arith.constant 0 : index
    %c0_17 = arith.constant 0 : index
    %c0_18 = arith.constant 0 : index
    %30 = vector.load %arg8[%c0_16, %c0_17, %c0_18] : memref<1x8x16xf32, #tpu.memory_space<vmem>>, vector<1x8x16xf32>
    %31 = vector.shape_cast %30 : vector<1x8x16xf32> to vector<8x16xf32>
    %cst_19 = arith.constant dense<0.000000e+00> : vector<8x16xf32>
    %32 = tpu.matmul %29, %23, %cst_19 {dimension_numbers = #tpu.dot_dimension_numbers<[1], [1], [0], [0], [0, 0, 1, 0], [], []>} : vector<8x2048xf32>, vector<16x2048xf32>, vector<8x16xf32> -> vector<8x16xf32>
    %33 = arith.addf %31, %32 : vector<8x16xf32>
    %c0_20 = arith.constant 0 : index
    %c0_21 = arith.constant 0 : index
    %c0_22 = arith.constant 0 : index
    %34 = vector.load %arg8[%c0_20, %c0_21, %c0_22] : memref<1x8x16xf32, #tpu.memory_space<vmem>>, vector<1x8x16xf32>
    %35 = vector.shape_cast %34 : vector<1x8x16xf32> to vector<8x16xf32>
    %36 = vector.shape_cast %33 : vector<8x16xf32> to vector<1x8x16xf32>
    tpu.vector_store %arg8[%c0_20, %c0_21, %c0_22], %36 {strides = array<i32>} : memref<1x8x16xf32, #tpu.memory_space<vmem>>, vector<1x8x16xf32>,
    return
  }
  func.func @transform_0(%arg0: i32, %arg1: i32) -> (i32, i32) {
    %c1_i32 = arith.constant 1 : i32
    %0 = arith.muli %arg0, %c1_i32 : i32
    %1 = arith.addi %0, %arg1 : i32
    %c0_i32 = arith.constant 0 : i32
    %c0_i32_0 = arith.constant 0 : i32
    return %c0_i32, %1 : i32, i32
  }
  func.func @transform_1(%arg0: i32, %arg1: i32) -> (i32, i32) {
    %c1_i32 = arith.constant 1 : i32
    %0 = arith.muli %arg0, %c1_i32 : i32
    %1 = arith.addi %0, %arg1 : i32
    %c0_i32 = arith.constant 0 : i32
    %c0_i32_0 = arith.constant 0 : i32
    return %1, %c0_i32 : i32, i32
  }
  func.func @transform_2(%arg0: i32, %arg1: i32) -> (i32, i32) {
    %c0_i32 = arith.constant 0 : i32
    %c0_i32_0 = arith.constant 0 : i32
    %c0_i32_1 = arith.constant 0 : i32
    return %c0_i32, %c0_i32_0 : i32, i32
  }
  func.func @transform_3(%arg0: i32, %arg1: i32) -> (i32, i32) {
    %c0_i32 = arith.constant 0 : i32
    %c0_i32_0 = arith.constant 0 : i32
    %c0_i32_1 = arith.constant 0 : i32
    return %c0_i32, %c0_i32_0 : i32, i32
  }
  func.func @transform_4(%arg0: i32, %arg1: i32) -> (i32, i32) {
    %c0_i32 = arith.constant 0 : i32
    %c0_i32_0 = arith.constant 0 : i32
    %c0_i32_1 = arith.constant 0 : i32
    return %c0_i32, %c0_i32_0 : i32, i32
  }
  func.func @transform_5(%arg0: i32, %arg1: i32) -> (i32, i32) {
    %c0_i32 = arith.constant 0 : i32
    %c0_i32_0 = arith.constant 0 : i32
    %c0_i32_1 = arith.constant 0 : i32
    return %c0_i32, %c0_i32_0 : i32, i32
  }
  func.func @transform_6(%arg0: i32, %arg1: i32) -> (i32, i32, i32) {
    %c0_i32 = arith.constant 0 : i32
    %c0_i32_0 = arith.constant 0 : i32
    %c0_i32_1 = arith.constant 0 : i32
    return %arg0, %c0_i32, %c0_i32_0 : i32, i32, i32
  }
}

</mosaic_0001>

<bundles_post_ra>
// kernel: tpu_custom_call.1
= control target key start
LH: loop header
LB: loop body
LE: loop exit
PB: predicated region body
PF: predicated region fallthrough
CT: control target
= control target key end

     0   :  { %11 = vsyncpa [#allocation3], 0  ;;  %s6091_s0 = inlined_call_operand.vmem [shape: s32[1,4096], index: 0, kind: input, shape index: {}]   ;;  %s6092_s1 = inlined_call_operand.vmem [shape: f32[4096,32], index: 1, kind: input, shape index: {}]   ;;  %s6093_s2 = inlined_call_operand.vmem [shape: f32[16,32], index: 2, kind: input, shape index: {}]   ;;  %s6094_s3 = inlined_call_operand.vmem [shape: f32[16,1], index: 3, kind: input, shape index: {}]   ;;  %s6095_s4 = inlined_call_operand.vmem [shape: f32[16,16], index: 4, kind: input, shape index: {}]   ;;  %s6096_s5 = inlined_call_operand.vmem [shape: f32[16,1], index: 5, kind: input, shape index: {}]   ;;  %s6097_s6 = inlined_call_operand.hbm [shape: f32[2,8,16], index: 6, kind: output, shape index: {}]  }
   0x1   :  { %13 = vsyncpa [#allocation3 + $0x1], 0  ;;  %s5035_s21 = smov 0   ;;  %s5037_s22 = smov 0  }
   0x2   :  { %s5039_s23 = smov 0   ;;  %s5041_s24 = smov 0  }
   0x3   :  { %s5043_s25 = smov 0   ;;  %s5045_s26 = smov 0  }
   0x4 LB: > { %s3658_s27 = sadd.s32 4294967295, %s4994_s26   ;;  %s3659_s28 = sadd.s32 4294967294, %s4994_s26   ;;  %s4994_s26 = sphi %s5045_s26, %s19_s26   ;;  %s4990_s25 = sphi %s5043_s25, %s6106_s25   ;;  %s4986_s24 = sphi %s5041_s24, %s6105_s24   ;;  %s4982_s23 = sphi %s5039_s23, %s6104_s23   ;;  %s4978_s22 = sphi %s5037_s22, %s6103_s22   ;;  %s4974_s21 = sphi %s5035_s21, %s6102_s21  }
   0x5   : > { %s31_s29 = sadd.s32 1, %s4990_s25  ;;  %s178_s30 = sadd.s32 1, %s4982_s23 }
   0x6   : > { %p33_p0 = scmp.ge.s32.totalorder %s31_s29, 2  ;;  %p188_p1 = scmp.ne.s32.totalorder %s4982_s23, %s4978_s22 }
   0x7   : > { %p189_p2 = scmp.eq.s32.totalorder %s3658_s27, 1  ;;  %p194_p3 = scmp.ne.s32.totalorder %s4978_s22, %s4974_s21 }
   0x8   : > { %s6108_s29 = smov (%p33_p0, %s31_s29), 0  ;;  %p195_p5 = scmp.eq.s32.totalorder %s3659_s28, 1 }
   0x9   : > { %p5075_p4 = por %p189_p2, %p188_p1  ;;  %s175_s8 = ssub.s32 %s4990_s25, %s6108_s29 }
   0xa   : > { %p3662_p6 = scmp.ge.s32.totalorder %s4994_s26, 1  ;;  %p176_p7 = scmp.eq.s32.totalorder %s175_s8, 0 }
   0xb   : > { %p5082_p8 = por %p195_p5, %p194_p3  ;;  %p246_p9 = scmp.lt.s32.totalorder %s4994_s26, 3 }
   0xc   : > { %s5088_s10 = scalar_select %p176_p7, %s4982_s23, %s178_s30  }
   0xd   : > { %p247_p10 = pnand %p3662_p6, %p246_p9 }
   0xe   : > { %s3665_s11 = sshll.u32 (!%p247_p10), %s4986_s24, 8  ;;  %vm573_vm0 = vcmask (!%p247_p10), 261120   ;;  %v5094_v0 = vld [vmem:[%s6093_s2] sm:$0xff] (!%p247_p10)  ;;  %v4996_v50 = vmov (!%p247_p10), 0   ;;  %v4997_v1 = vmov (!%p247_p10), 0.0   ;;  %vm301_vm2 = vcmask (!%p247_p10), 130048  }
   0xf   : > { %250 = sbr.rel (%p247_p10) target bundleno = 1006 (0x3ee), region = 44  ;;  %p291_p11 = scmp.lt.s32.totalorder (!%p247_p10), %s3665_s11, 511  ;;  %4023 = vmatprep.mubr.msk.f32.mxu0 (!%p247_p10), %vm573_vm0, %v5094_v0  ;;  %4059 = vmatprep.mubr.msk.f32.mxu1 (!%p247_p10), %vm573_vm0, %v5094_v0  ;;  %vm5107_vm1 = vmpackc.low (!%p247_p10), %vm573_vm0, %vm573_vm0 }
  0x10   : > { %4785 = vset.pattern.permute.xlu0 (!%p247_p10), %v4996_v50  ;;  %4786 = vset.pattern.permute.xlu1 (!%p247_p10), %v4996_v50  ;;  %s3664_s20 = sshll.u32 (!%p247_p10), %s4986_s24, 4  ;;  %s279_s8 = sand.u32 (!%p247_p10), 1, %s4978_s22  }
  0x11   : > { %p284_p12 = scmp.lt.s32.totalorder (!%p247_p10), %s3664_s20, 31  ;;  %s3988_s13 = sshll.u32 (!%p247_p10), %s4986_s24, 7 }
  0x12   : > { %s3569_s18 = scalar_lea.sflag (!%p247_p10), [#allocation3], %s279_s8  ;;  %s4999_s24 = smov (!%p247_p10), [#allocation2]  }
  0x16   : > { %s6110_s11 = smov (!%p291_p11, %s3665_s11), 511  ;;  %s6112_s20 = smov (!%p284_p12, %s3664_s20), 31 }
  0x17   : > { %s3666_s14 = sshll.u32 %s6110_s11, 3  ;;  %s5943_s30 = scalar_lea.vmem %s6091_s0, %s6112_s20 }
  0x18   : > { %s5103_s17 = scalar_lea.vmem %s6092_s1, %s3666_s14  ;;  %s3663_s11 = sshll.u32 %s279_s8, 3 }
  0x19   : > { %v321_v2 = vld [vmem:[%s5103_s17 + $0x80] sm:$0xff]  ;;  %v322_v3 = vld [vmem:[%s5103_s17 + $0x88] sm:$0xff]  ;;  %v323_v13 = vld [vmem:[%s5103_s17 + $0x90] sm:$0xff]  ;;  %s281_s12 = scalar_lea.vmem [#allocation2], %s3663_s11  ;;  %s4920_s20 = sshll.u32 %s4999_s24, 4  ;;  %s4921_s20 = int_to_ptr.vmem [resolvable:$false] %s4920_s20 }
  0x1a   : > { %v353_v4 = vld [vmem:[%s5103_s17 + $0x180] sm:$0xff]  ;;  %v4279_v5 = vpack.c.bf16 %v322_v3, %v321_v2  ;;  %v354_v6 = vld [vmem:[%s5103_s17 + $0x188] sm:$0xff]  ;;  %v324_v15 = vld [vmem:[%s5103_s17 + $0x98] sm:$0xff]  ;;  %302 = vst.msk [vmem:[%s281_s12] sm:$0xff] %vm301_vm2, %v4997_v1  ;;  %s3582_s14 = sshll.u32 %s281_s12, 4  ;;  %s4922_s27 = scalar_lea.vmem %s4921_s20, 256  ;;  %s6045_s14 = int_to_ptr.vmem [resolvable:$true] %s3582_s14 }
  0x1b   : > { %v305_v7 = vld [vmem:[%s5103_s17] sm:$0xff]  ;;  %v306_v8 = vld [vmem:[%s5103_s17 + $0x8] sm:$0xff]  ;;  %v4327_v9 = vpack.c.bf16 %v354_v6, %v353_v4  ;;  %v355_v16 = vld [vmem:[%s5103_s17 + $0x190] sm:$0xff]  ;;  %v4285_v18 = vpack.c.bf16 %v324_v15, %v323_v13  ;;  %s4916_s19 = scalar_lea.vmem %s6045_s14, 128  ;;  %p4923_p2 = scmp.lt.s32.totalorder %s6045_s14, %s4921_s20 }
  0x1c   : > { %v4282_v10 = vpack.c.bf16 %v306_v8, %v305_v7  ;;  %v337_v11 = vld [vmem:[%s5103_s17 + $0x100] sm:$0xff]  ;;  %v338_v12 = vld [vmem:[%s5103_s17 + $0x108] sm:$0xff]  ;;  %4281 = vmatprep.subr.msk.bf16.mxu0 %vm5107_vm1, %v4279_v5  ;;  %v356_v17 = vld [vmem:[%s5103_s17 + $0x198] sm:$0xff]  ;;  %p4917_p13 = scmp.ne.s32.totalorder %s6045_s14, %s4916_s19  ;;  %p4924_p3 = scmp.lt.s32.totalorder %s4922_s27, %s4916_s19 }
  0x1d   : > { %v4330_v14 = vpack.c.bf16 %v338_v12, %v337_v11  ;;  %4329 = vmatprep.subr.msk.bf16.mxu1 %vm5107_vm1, %v4327_v9  ;;  %v4333_v19 = vpack.c.bf16 %v356_v17, %v355_v16  ;;  %v307_v20 = vld [vmem:[%s5103_s17 + $0x10] sm:$0xff]  ;;  %v308_v21 = vld [vmem:[%s5103_s17 + $0x18] sm:$0xff]  ;;  %v325_v24 = vld [vmem:[%s5103_s17 + $0xa0] sm:$0xff] }
  0x1e   : > { %4284 = vmatpush3.bf16.xpose.msk.msra.mxu0 %vm5107_vm1, %v4282_v10  ;;  %v339_v22 = vld [vmem:[%s5103_s17 + $0x110] sm:$0xff]  ;;  %v340_v23 = vld [vmem:[%s5103_s17 + $0x118] sm:$0xff]  ;;  %v326_v25 = vld [vmem:[%s5103_s17 + $0xa8] sm:$0xff]  ;;  %v4288_v28 = vpack.c.bf16 %v308_v21, %v307_v20  ;;  %p4918_p0 = pnand %p4917_p13, %p5075_p4  ;;  %p4925_p5 = por %p4924_p3, %p4923_p2 }
  0x1f   : > { %4332 = vmatpush3.bf16.xpose.msk.msra.mxu1 %vm5107_vm1, %v4330_v14  ;;  %4287 = vmatprep.subr.msk.bf16.mxu0 %vm5107_vm1, %v4285_v18  ;;  %v357_v26 = vld [vmem:[%s5103_s17 + $0x1a0] sm:$0xff]  ;;  %v358_v27 = vld [vmem:[%s5103_s17 + $0x1a8] sm:$0xff]  ;;  %v4336_v29 = vpack.c.bf16 %v340_v23, %v339_v22  ;;  %v4291_v30 = vpack.c.bf16 %v326_v25, %v325_v24  ;;  %v327_v36 = vld [vmem:[%s5103_s17 + $0xb0] sm:$0xff] }
  0x20   : > { %4335 = vmatprep.subr.msk.bf16.mxu1 %vm5107_vm1, %v4333_v19  ;;  %v4339_v31 = vpack.c.bf16 %v358_v27, %v357_v26  ;;  %v309_v32 = vld [vmem:[%s5103_s17 + $0x20] sm:$0xff]  ;;  %v310_v33 = vld [vmem:[%s5103_s17 + $0x28] sm:$0xff]  ;;  %v328_v37 = vld [vmem:[%s5103_s17 + $0xb8] sm:$0xff]  ;;  %p4919_p1 = pneg %p4918_p0 }
  0x21   : > { %v341_v34 = vld [vmem:[%s5103_s17 + $0x120] sm:$0xff]  ;;  %v342_v35 = vld [vmem:[%s5103_s17 + $0x128] sm:$0xff]  ;;  %v359_v38 = vld [vmem:[%s5103_s17 + $0x1b0] sm:$0xff]  ;;  %v4294_v40 = vpack.c.bf16 %v310_v33, %v309_v32  ;;  %v4297_v42 = vpack.c.bf16 %v328_v37, %v327_v36 }
  0x22   : > { %v360_v39 = vld [vmem:[%s5103_s17 + $0x1b8] sm:$0xff]  ;;  %v4342_v41 = vpack.c.bf16 %v342_v35, %v341_v34  ;;  %v311_v44 = vld [vmem:[%s5103_s17 + $0x30] sm:$0xff]  ;;  %v329_v48 = vld [vmem:[%s5103_s17 + $0xc0] sm:$0xff]  ;;  %p4926_p6 = pnand %p4925_p5, %p4919_p1 }
  0x23   : > { %v4345_v43 = vpack.c.bf16 %v360_v39, %v359_v38  ;;  %v312_v45 = vld [vmem:[%s5103_s17 + $0x38] sm:$0xff]  ;;  %v343_v46 = vld [vmem:[%s5103_s17 + $0x130] sm:$0xff]  ;;  %v330_v49 = vld [vmem:[%s5103_s17 + $0xc8] sm:$0xff] }
  0x24   : > { %v344_v47 = vld [vmem:[%s5103_s17 + $0x138] sm:$0xff]  ;;  %v361_v51 = vld [vmem:[%s5103_s17 + $0x1c0] sm:$0xff]  ;;  %v362_v52 = vld [vmem:[%s5103_s17 + $0x1c8] sm:$0xff]  ;;  %v4300_v53 = vpack.c.bf16 %v312_v45, %v311_v44  ;;  %v4303_v55 = vpack.c.bf16 %v330_v49, %v329_v48 }
  0x25   : > { %v4348_v54 = vpack.c.bf16 %v344_v47, %v343_v46  ;;  %v4351_v56 = vpack.c.bf16 %v362_v52, %v361_v51  ;;  %v313_v57 = vld [vmem:[%s5103_s17 + $0x40] sm:$0xff]  ;;  %v314_v58 = vld [vmem:[%s5103_s17 + $0x48] sm:$0xff]  ;;  %v331_v61 = vld [vmem:[%s5103_s17 + $0xd0] sm:$0xff] }
  0x26   : > { %4290 = vmatpush3.bf16.xpose.msk.msra.mxu0 %vm5107_vm1, %v4288_v28  ;;  %v345_v59 = vld [vmem:[%s5103_s17 + $0x140] sm:$0xff]  ;;  %v346_v60 = vld [vmem:[%s5103_s17 + $0x148] sm:$0xff]  ;;  %v332_v62 = vld [vmem:[%s5103_s17 + $0xd8] sm:$0xff]  ;;  %v4306_v3 = vpack.c.bf16 %v314_v58, %v313_v57 }
  0x27   : > { %4338 = vmatpush3.bf16.xpose.msk.msra.mxu1 %vm5107_vm1, %v4336_v29  ;;  %4293 = vmatprep.subr.msk.bf16.mxu0 %vm5107_vm1, %v4291_v30  ;;  %v363_v63 = vld [vmem:[%s5103_s17 + $0x1d0] sm:$0xff]  ;;  %v364_v2 = vld [vmem:[%s5103_s17 + $0x1d8] sm:$0xff]  ;;  %v4354_v4 = vpack.c.bf16 %v346_v60, %v345_v59  ;;  %v4309_v5 = vpack.c.bf16 %v332_v62, %v331_v61  ;;  %v333_v11 = vld [vmem:[%s5103_s17 + $0xe0] sm:$0xff] }
  0x28   : > { %4341 = vmatprep.subr.msk.bf16.mxu1 %vm5107_vm1, %v4339_v31  ;;  %v4357_v6 = vpack.c.bf16 %v364_v2, %v363_v63  ;;  %v315_v7 = vld [vmem:[%s5103_s17 + $0x50] sm:$0xff]  ;;  %v316_v8 = vld [vmem:[%s5103_s17 + $0x58] sm:$0xff]  ;;  %v334_v12 = vld [vmem:[%s5103_s17 + $0xe8] sm:$0xff] }
  0x29   : > { %v347_v9 = vld [vmem:[%s5103_s17 + $0x150] sm:$0xff]  ;;  %v348_v10 = vld [vmem:[%s5103_s17 + $0x158] sm:$0xff]  ;;  %v365_v13 = vld [vmem:[%s5103_s17 + $0x1e0] sm:$0xff]  ;;  %v4312_v15 = vpack.c.bf16 %v316_v8, %v315_v7  ;;  %v4315_v17 = vpack.c.bf16 %v334_v12, %v333_v11 }
  0x2a   : > { %v366_v14 = vld [vmem:[%s5103_s17 + $0x1e8] sm:$0xff]  ;;  %v4360_v16 = vpack.c.bf16 %v348_v10, %v347_v9  ;;  %v317_v19 = vld [vmem:[%s5103_s17 + $0x60] sm:$0xff]  ;;  %v335_v23 = vld [vmem:[%s5103_s17 + $0xf0] sm:$0xff] }
  0x2b   : > { %v4363_v18 = vpack.c.bf16 %v366_v14, %v365_v13  ;;  %v318_v20 = vld [vmem:[%s5103_s17 + $0x68] sm:$0xff]  ;;  %v349_v21 = vld [vmem:[%s5103_s17 + $0x160] sm:$0xff]  ;;  %v336_v24 = vld [vmem:[%s5103_s17 + $0xf8] sm:$0xff] }
  0x2c   : > { %v350_v22 = vld [vmem:[%s5103_s17 + $0x168] sm:$0xff]  ;;  %v367_v25 = vld [vmem:[%s5103_s17 + $0x1f0] sm:$0xff]  ;;  %v368_v26 = vld [vmem:[%s5103_s17 + $0x1f8] sm:$0xff]  ;;  %v4318_v27 = vpack.c.bf16 %v318_v20, %v317_v19  ;;  %v4321_v29 = vpack.c.bf16 %v336_v24, %v335_v23 }
  0x2d   : > { %v4366_v28 = vpack.c.bf16 %v350_v22, %v349_v21  ;;  %v4369_v30 = vpack.c.bf16 %v368_v26, %v367_v25  ;;  %v561_v31 = vld [vmem:[%s6094_s3] sm:$0xff]  ;;  %v562_v32 = vld [vmem:[%s6094_s3 + $0x8] sm:$0xff]  ;;  %v319_v33 = vld [vmem:[%s5103_s17 + $0x70] sm:$0xff] }
  0x2e   : > { %4296 = vmatpush3.bf16.xpose.msk.msra.mxu0 %vm5107_vm1, %v4294_v40  ;;  %565 = vperm.xlu0 %4785, %v561_v31   ;;  %v320_v34 = vld [vmem:[%s5103_s17 + $0x78] sm:$0xff]  ;;  %v351_v35 = vld [vmem:[%s5103_s17 + $0x170] sm:$0xff]  ;;  %v385_v37 = vld [vmem:[%s5103_s17 + $0x280] sm:$0xff] }
  0x2f   : > { %4344 = vmatpush3.bf16.xpose.msk.msra.mxu1 %vm5107_vm1, %v4342_v41  ;;  %4299 = vmatprep.subr.msk.bf16.mxu0 %vm5107_vm1, %v4297_v42  ;;  %v352_v36 = vld [vmem:[%s5103_s17 + $0x178] sm:$0xff]  ;;  %v386_v38 = vld [vmem:[%s5103_s17 + $0x288] sm:$0xff]  ;;  %v417_v39 = vld [vmem:[%s5103_s17 + $0x380] sm:$0xff]  ;;  %v4324_v41 = vpack.c.bf16 %v320_v34, %v319_v33 }
  0x30   : > { %4347 = vmatprep.subr.msk.bf16.mxu1 %vm5107_vm1, %v4345_v43  ;;  %v418_v40 = vld [vmem:[%s5103_s17 + $0x388] sm:$0xff]  ;;  %v4372_v42 = vpack.c.bf16 %v352_v36, %v351_v35  ;;  %v4375_v43 = vpack.c.bf16 %v386_v38, %v385_v37  ;;  %v369_v45 = vld [vmem:[%s5103_s17 + $0x200] sm:$0xff]  ;;  %v387_v49 = vld [vmem:[%s5103_s17 + $0x290] sm:$0xff] }
  0x31   : > { %v4423_v44 = vpack.c.bf16 %v418_v40, %v417_v39  ;;  %v370_v46 = vld [vmem:[%s5103_s17 + $0x208] sm:$0xff]  ;;  %v401_v47 = vld [vmem:[%s5103_s17 + $0x300] sm:$0xff]  ;;  %v388_v50 = vld [vmem:[%s5103_s17 + $0x298] sm:$0xff] }
  0x32   : > { %570 = vperm.xlu0 %4785, %v562_v32   ;;  %v402_v48 = vld [vmem:[%s5103_s17 + $0x308] sm:$0xff]  ;;  %v4378_v51 = vpack.c.bf16 %v370_v46, %v369_v45  ;;  %v419_v52 = vld [vmem:[%s5103_s17 + $0x390] sm:$0xff]  ;;  %v372_v59 = vld [vmem:[%s5103_s17 + $0x218] sm:$0xff] }
  0x33   : > { %v371_v58 = vld [vmem:[%s5103_s17 + $0x210] sm:$0xff]  ;;  %v404_v61 = vld [vmem:[%s5103_s17 + $0x318] sm:$0xff]  ;;  %v389_v62 = vld [vmem:[%s5103_s17 + $0x2a0] sm:$0xff] }
  0x34   : > { %v403_v60 = vld [vmem:[%s5103_s17 + $0x310] sm:$0xff]  ;;  %v390_v63 = vld [vmem:[%s5103_s17 + $0x2a8] sm:$0xff]  ;;  %v421_v2 = vld [vmem:[%s5103_s17 + $0x3a0] sm:$0xff] }
  0x35   : > { %v373_v8 = vld [vmem:[%s5103_s17 + $0x220] sm:$0xff]  ;;  %v374_v9 = vld [vmem:[%s5103_s17 + $0x228] sm:$0xff]  ;;  %v391_v12 = vld [vmem:[%s5103_s17 + $0x2b0] sm:$0xff] }
  0x36   : > { %4302 = vmatpush3.bf16.xpose.msk.msra.mxu0 %vm5107_vm1, %v4300_v53  ;;  %v420_v53 = vld [vmem:[%s5103_s17 + $0x398] sm:$0xff]  ;;  %v405_v10 = vld [vmem:[%s5103_s17 + $0x320] sm:$0xff]  ;;  %v406_v11 = vld [vmem:[%s5103_s17 + $0x328] sm:$0xff] }
  0x37   : > { %4350 = vmatpush3.bf16.xpose.msk.msra.mxu1 %vm5107_vm1, %v4348_v54  ;;  %4305 = vmatprep.subr.msk.bf16.mxu0 %vm5107_vm1, %v4303_v55  ;;  %v4426_v54 = vpack.c.bf16 %v402_v48, %v401_v47  ;;  %v5264_v55 = vld [vmem:[%s6093_s2 + $0x8] sm:$0xff]  ;;  %v4429_v57 = vpack.c.bf16 %v420_v53, %v419_v52  ;;  %v392_v13 = vld [vmem:[%s5103_s17 + $0x2b8] sm:$0xff]  ;;  %v423_v14 = vld [vmem:[%s5103_s17 + $0x3b0] sm:$0xff] }
  0x38   : > { %4353 = vmatprep.subr.msk.bf16.mxu1 %vm5107_vm1, %v4351_v56  ;;  %v4381_v56 = vpack.c.bf16 %v388_v50, %v387_v49  ;;  %v375_v20 = vld [vmem:[%s5103_s17 + $0x230] sm:$0xff]  ;;  %v376_v21 = vld [vmem:[%s5103_s17 + $0x238] sm:$0xff]  ;;  %v393_v24 = vld [vmem:[%s5103_s17 + $0x2c0] sm:$0xff] }
  0x39   : > { %v407_v22 = vld [vmem:[%s5103_s17 + $0x330] sm:$0xff]  ;;  %v408_v23 = vld [vmem:[%s5103_s17 + $0x338] sm:$0xff]  ;;  %v394_v25 = vld [vmem:[%s5103_s17 + $0x2c8] sm:$0xff] }
  0x3a   : > { %v425_v26 = vld [vmem:[%s5103_s17 + $0x3c0] sm:$0xff]  ;;  %v378_v33 = vld [vmem:[%s5103_s17 + $0x248] sm:$0xff]  ;;  %v395_v36 = vld [vmem:[%s5103_s17 + $0x2d0] sm:$0xff] }
  0x3b   : > { %v377_v32 = vld [vmem:[%s5103_s17 + $0x240] sm:$0xff]  ;;  %v410_v35 = vld [vmem:[%s5103_s17 + $0x348] sm:$0xff]  ;;  %v396_v37 = vld [vmem:[%s5103_s17 + $0x2d8] sm:$0xff] }
  0x3c   : > { %v409_v34 = vld [vmem:[%s5103_s17 + $0x340] sm:$0xff]  ;;  %v427_v38 = vld [vmem:[%s5103_s17 + $0x3d0] sm:$0xff]  ;;  %v428_v39 = vld [vmem:[%s5103_s17 + $0x3d8] sm:$0xff]  ;;  %v4402_v40 = vpack.c.bf16 %v378_v33, %v377_v32 }
  0x3d   : > { %v380_v45 = vld [vmem:[%s5103_s17 + $0x258] sm:$0xff]  ;;  %v411_v46 = vld [vmem:[%s5103_s17 + $0x350] sm:$0xff]  ;;  %v397_v48 = vld [vmem:[%s5103_s17 + $0x2e0] sm:$0xff] }
  0x3e   : > { %4308 = vmatpush3.bf16.xpose.msk.msra.mxu0 %vm5107_vm1, %v4306_v3  ;;  %v422_v3 = vld [vmem:[%s5103_s17 + $0x3a8] sm:$0xff]  ;;  %v412_v47 = vld [vmem:[%s5103_s17 + $0x358] sm:$0xff]  ;;  %v429_v50 = vld [vmem:[%s5103_s17 + $0x3e0] sm:$0xff] }
  0x3f   : > { %4356 = vmatpush3.bf16.xpose.msk.msra.mxu1 %vm5107_vm1, %v4354_v4  ;;  %4311 = vmatprep.subr.msk.bf16.mxu0 %vm5107_vm1, %v4309_v5  ;;  %v4384_v4 = vpack.c.bf16 %v372_v59, %v371_v58  ;;  %v4432_v5 = vpack.c.bf16 %v404_v61, %v403_v60  ;;  %v4435_v7 = vpack.c.bf16 %v422_v3, %v421_v2  ;;  %v398_v49 = vld [vmem:[%s5103_s17 + $0x2e8] sm:$0xff]  ;;  %v413_v59 = vld [vmem:[%s5103_s17 + $0x360] sm:$0xff]  ;;  %v399_v61 = vld [vmem:[%s5103_s17 + $0x2f0] sm:$0xff] }
  0x40   : > { %4359 = vmatprep.subr.msk.bf16.mxu1 %vm5107_vm1, %v4357_v6  ;;  %v4387_v6 = vpack.c.bf16 %v390_v63, %v389_v62  ;;  %v4456_v53 = vpack.c.bf16 %v412_v47, %v411_v46  ;;  %v382_v58 = vld [vmem:[%s5103_s17 + $0x268] sm:$0xff]  ;;  %v400_v62 = vld [vmem:[%s5103_s17 + $0x2f8] sm:$0xff]  ;;  %v431_v63 = vld [vmem:[%s5103_s17 + $0x3f0] sm:$0xff] }
  0x41   : > { %v414_v60 = vld [vmem:[%s5103_s17 + $0x368] sm:$0xff]  ;;  %v432_v2 = vld [vmem:[%s5103_s17 + $0x3f8] sm:$0xff]  ;;  %v467_v33 = vld [vmem:[%s5103_s17 + $0x510] sm:$0xff] }
  0x42   : > { %v436_v32 = vld [vmem:[%s5103_s17 + $0x418] sm:$0xff]  ;;  %v470_v46 = vld [vmem:[%s5103_s17 + $0x528] sm:$0xff]  ;;  %v455_v47 = vld [vmem:[%s5103_s17 + $0x4b0] sm:$0xff] }
  0x46   : > { %4314 = vmatpush3.bf16.xpose.msk.msra.mxu0 %vm5107_vm1, %v4312_v15  ;;  %v424_v15 = vld [vmem:[%s5103_s17 + $0x3b8] sm:$0xff] }
  0x47   : > { %4362 = vmatpush3.bf16.xpose.msk.msra.mxu1 %vm5107_vm1, %v4360_v16  ;;  %4317 = vmatprep.subr.msk.bf16.mxu0 %vm5107_vm1, %v4315_v17  ;;  %v4390_v16 = vpack.c.bf16 %v374_v9, %v373_v8  ;;  %v4438_v17 = vpack.c.bf16 %v406_v11, %v405_v10  ;;  %v4441_v19 = vpack.c.bf16 %v424_v15, %v423_v14  ;;  %v384_v8 = vld [vmem:[%s5103_s17 + $0x278] sm:$0xff]  ;;  %v415_v9 = vld [vmem:[%s5103_s17 + $0x370] sm:$0xff]  ;;  %v449_v11 = vld [vmem:[%s5103_s17 + $0x480] sm:$0xff] }
  0x48   : > { %4365 = vmatprep.subr.msk.bf16.mxu1 %vm5107_vm1, %v4363_v18  ;;  %v4393_v18 = vpack.c.bf16 %v392_v13, %v391_v12  ;;  %v416_v10 = vld [vmem:[%s5103_s17 + $0x378] sm:$0xff]  ;;  %v450_v12 = vld [vmem:[%s5103_s17 + $0x488] sm:$0xff]  ;;  %v481_v13 = vld [vmem:[%s5103_s17 + $0x580] sm:$0xff] }
  0x49   : > { %v482_v14 = vld [vmem:[%s5103_s17 + $0x588] sm:$0xff] }
  0x4e   : > { %4320 = vmatpush3.bf16.xpose.msk.msra.mxu0 %vm5107_vm1, %v4318_v27  ;;  %v426_v27 = vld [vmem:[%s5103_s17 + $0x3c8] sm:$0xff] }
  0x4f   : > { %4368 = vmatpush3.bf16.xpose.msk.msra.mxu1 %vm5107_vm1, %v4366_v28  ;;  %4323 = vmatprep.subr.msk.bf16.mxu0 %vm5107_vm1, %v4321_v29  ;;  %v4396_v28 = vpack.c.bf16 %v376_v21, %v375_v20  ;;  %v4444_v29 = vpack.c.bf16 %v408_v23, %v407_v22  ;;  %v4447_v31 = vpack.c.bf16 %v426_v27, %v425_v26  ;;  %v434_v20 = vld [vmem:[%s5103_s17 + $0x408] sm:$0xff]  ;;  %v465_v21 = vld [vmem:[%s5103_s17 + $0x500] sm:$0xff]  ;;  %v451_v23 = vld [vmem:[%s5103_s17 + $0x490] sm:$0xff] }
  0x50   : > { %4371 = vmatprep.subr.msk.bf16.mxu1 %vm5107_vm1, %v4369_v30  ;;  %v4399_v30 = vpack.c.bf16 %v394_v25, %v393_v24  ;;  %v466_v22 = vld [vmem:[%s5103_s17 + $0x508] sm:$0xff]  ;;  %v452_v24 = vld [vmem:[%s5103_s17 + $0x498] sm:$0xff]  ;;  %v483_v26 = vld [vmem:[%s5103_s17 + $0x590] sm:$0xff] }
  0x51   : > { %v484_v27 = vld [vmem:[%s5103_s17 + $0x598] sm:$0xff] }
  0x56   : > { %4326 = vmatpush3.bf16.xpose.msk.msra.mxu0 %vm5107_vm1, %v4324_v41  ;;  %v4450_v41 = vpack.c.bf16 %v410_v35, %v409_v34  ;;  %v468_v34 = vld [vmem:[%s5103_s17 + $0x518] sm:$0xff]  ;;  %v453_v35 = vld [vmem:[%s5103_s17 + $0x4a0] sm:$0xff] }
  0x57   : > { %4374 = vmatpush3.bf16.xpose.msk.msra.mxu1 %vm5107_vm1, %v4372_v42  ;;  %4377 = vmatprep.subr.msk.bf16.mxu0 %vm5107_vm1, %v4375_v43  ;;  %v4405_v42 = vpack.c.bf16 %v396_v37, %v395_v36  ;;  %v4453_v43 = vpack.c.bf16 %v428_v39, %v427_v38  ;;  %v454_v36 = vld [vmem:[%s5103_s17 + $0x4a8] sm:$0xff]  ;;  %v485_v37 = vld [vmem:[%s5103_s17 + $0x5a0] sm:$0xff] }
  0x58   : > { %4425 = vmatprep.subr.msk.bf16.mxu1 %vm5107_vm1, %v4423_v44  ;;  %v379_v44 = vld [vmem:[%s5103_s17 + $0x250] sm:$0xff]  ;;  %v486_v38 = vld [vmem:[%s5103_s17 + $0x5a8] sm:$0xff] }
  0x59   : > { %v4408_v52 = vpack.c.bf16 %v380_v45, %v379_v44  ;;  %v438_v44 = vld [vmem:[%s5103_s17 + $0x428] sm:$0xff]  ;;  %v469_v45 = vld [vmem:[%s5103_s17 + $0x520] sm:$0xff] }
  0x5d   : > { %4024 = vmatmul.mubr.msk.f32.vlgmr.msra.gmra.mrb[0].mxu0 %vm573_vm0, %v5094_v0 }
  0x5e   : > { %4060 = vmatmul.mubr.msk.f32.vlgmr.msra.gmra.mrb[0].mxu1 %vm573_vm0, %v5094_v0  ;;  %4380 = vmatpush3.bf16.xpose.msk.msra.mxu0 %vm5107_vm1, %v4378_v51  ;;  %v430_v51 = vld [vmem:[%s5103_s17 + $0x3e8] sm:$0xff] }
  0x5f   : > { %4428 = vmatpush3.bf16.xpose.msk.msra.mxu1 %vm5107_vm1, %v4426_v54  ;;  %4025 = vmatprep.mubr.msk.f32.mxu0 %vm573_vm0, %v5264_v55  ;;  %v4411_v54 = vpack.c.bf16 %v398_v49, %v397_v48  ;;  %v456_v48 = vld [vmem:[%s5103_s17 + $0x4b8] sm:$0xff]  ;;  %v487_v49 = vld [vmem:[%s5103_s17 + $0x5b0] sm:$0xff] }
  0x60   : > { %4061 = vmatprep.mubr.msk.f32.mxu1 %vm573_vm0, %v5264_v55  ;;  %4383 = vmatprep.subr.msk.bf16.mxu0 %vm5107_vm1, %v4381_v56  ;;  %v4459_v56 = vpack.c.bf16 %v430_v51, %v429_v50  ;;  %v488_v50 = vld [vmem:[%s5103_s17 + $0x5b8] sm:$0xff] }
  0x61   : > { %4026 = vmatmul.mubr.msk.f32.gmra.mrb[2].mxu0 %vm573_vm0, %v5264_v55  ;;  %4431 = vmatprep.subr.msk.bf16.mxu1 %vm5107_vm1, %v4429_v57  ;;  %v381_v57 = vld [vmem:[%s5103_s17 + $0x260] sm:$0xff] }
  0x62   : > { %4062 = vmatmul.mubr.msk.f32.gmra.mrb[2].mxu1 %vm573_vm0, %v5264_v55  ;;  %4095 = vmatprep.mubr.msk.f32.mxu0 %vm573_vm0, %v5094_v0  ;;  %v4414_v3 = vpack.c.bf16 %v382_v58, %v381_v57  ;;  %v440_v57 = vld [vmem:[%s5103_s17 + $0x438] sm:$0xff]  ;;  %v471_v58 = vld [vmem:[%s5103_s17 + $0x530] sm:$0xff] }
  0x63   : > { %4131 = vmatprep.mubr.msk.f32.mxu1 %vm573_vm0, %v5094_v0 }
  0x66   : > { %4386 = vmatpush3.bf16.xpose.msk.msra.mxu0 %vm5107_vm1, %v4384_v4  ;;  %v4462_v4 = vpack.c.bf16 %v414_v60, %v413_v59  ;;  %v472_v59 = vld [vmem:[%s5103_s17 + $0x538] sm:$0xff]  ;;  %v457_v60 = vld [vmem:[%s5103_s17 + $0x4c0] sm:$0xff] }
  0x67   : > { %4434 = vmatpush3.bf16.xpose.msk.msra.mxu1 %vm5107_vm1, %v4432_v5  ;;  %4389 = vmatprep.subr.msk.bf16.mxu0 %vm5107_vm1, %v4387_v6  ;;  %v4417_v5 = vpack.c.bf16 %v400_v62, %v399_v61  ;;  %v4465_v6 = vpack.c.bf16 %v432_v2, %v431_v63  ;;  %v458_v61 = vld [vmem:[%s5103_s17 + $0x4c8] sm:$0xff]  ;;  %v489_v62 = vld [vmem:[%s5103_s17 + $0x5c0] sm:$0xff] }
  0x68   : > { %4437 = vmatprep.subr.msk.bf16.mxu1 %vm5107_vm1, %v4435_v7  ;;  %v383_v7 = vld [vmem:[%s5103_s17 + $0x270] sm:$0xff]  ;;  %v490_v63 = vld [vmem:[%s5103_s17 + $0x5c8] sm:$0xff] }
  0x69   : > { %v4420_v15 = vpack.c.bf16 %v384_v8, %v383_v7  ;;  %v442_v7 = vld [vmem:[%s5103_s17 + $0x448] sm:$0xff]  ;;  %v473_v8 = vld [vmem:[%s5103_s17 + $0x540] sm:$0xff] }
  0x6e   : > { %4392 = vmatpush3.bf16.xpose.msk.msra.mxu0 %vm5107_vm1, %v4390_v16  ;;  %v4468_v16 = vpack.c.bf16 %v416_v10, %v415_v9  ;;  %v474_v9 = vld [vmem:[%s5103_s17 + $0x548] sm:$0xff]  ;;  %v459_v10 = vld [vmem:[%s5103_s17 + $0x4d0] sm:$0xff] }
  0x6f   : > { %4440 = vmatpush3.bf16.xpose.msk.msra.mxu1 %vm5107_vm1, %v4438_v17  ;;  %4395 = vmatprep.subr.msk.bf16.mxu0 %vm5107_vm1, %v4393_v18  ;;  %v4471_v17 = vpack.c.bf16 %v450_v12, %v449_v11  ;;  %v4519_v18 = vpack.c.bf16 %v482_v14, %v481_v13  ;;  %v460_v11 = vld [vmem:[%s5103_s17 + $0x4d8] sm:$0xff]  ;;  %v491_v12 = vld [vmem:[%s5103_s17 + $0x5d0] sm:$0xff] }
  0x70   : > { %4443 = vmatprep.subr.msk.bf16.mxu1 %vm5107_vm1, %v4441_v19  ;;  %v433_v19 = vld [vmem:[%s5103_s17 + $0x400] sm:$0xff]  ;;  %v492_v13 = vld [vmem:[%s5103_s17 + $0x5d8] sm:$0xff] }
  0x71   : > { %v4474_v25 = vpack.c.bf16 %v434_v20, %v433_v19  ;;  %v444_v19 = vld [vmem:[%s5103_s17 + $0x458] sm:$0xff]  ;;  %v475_v20 = vld [vmem:[%s5103_s17 + $0x550] sm:$0xff] }
  0x76   : > { %4398 = vmatpush3.bf16.xpose.msk.msra.mxu0 %vm5107_vm1, %v4396_v28  ;;  %v4522_v28 = vpack.c.bf16 %v466_v22, %v465_v21  ;;  %v476_v21 = vld [vmem:[%s5103_s17 + $0x558] sm:$0xff]  ;;  %v461_v22 = vld [vmem:[%s5103_s17 + $0x4e0] sm:$0xff] }
  0x77   : > { %4446 = vmatpush3.bf16.xpose.msk.msra.mxu1 %vm5107_vm1, %v4444_v29  ;;  %4401 = vmatprep.subr.msk.bf16.mxu0 %vm5107_vm1, %v4399_v30  ;;  %v4477_v29 = vpack.c.bf16 %v452_v24, %v451_v23  ;;  %v4525_v30 = vpack.c.bf16 %v484_v27, %v483_v26  ;;  %v462_v23 = vld [vmem:[%s5103_s17 + $0x4e8] sm:$0xff]  ;;  %v493_v24 = vld [vmem:[%s5103_s17 + $0x5e0] sm:$0xff]  ;;  %v4552_v27 = vpack.c.bf16 %v476_v21, %v475_v20  ;;  %v519_v20 = vld [vmem:[%s5103_s17 + $0x6b0] sm:$0xff] }
  0x78   : > { %4449 = vmatprep.subr.msk.bf16.mxu1 %vm5107_vm1, %v4447_v31  ;;  %v435_v31 = vld [vmem:[%s5103_s17 + $0x410] sm:$0xff]  ;;  %v520_v21 = vld [vmem:[%s5103_s17 + $0x6b8] sm:$0xff] }
  0x79   : > { %v4480_v39 = vpack.c.bf16 %v436_v32, %v435_v31  ;;  %v446_v31 = vld [vmem:[%s5103_s17 + $0x468] sm:$0xff]  ;;  %v477_v32 = vld [vmem:[%s5103_s17 + $0x560] sm:$0xff] }
  0x7e   : > { %4404 = vmatpush3.bf16.xpose.msk.msra.mxu0 %vm5107_vm1, %v4402_v40  ;;  %v4528_v40 = vpack.c.bf16 %v468_v34, %v467_v33  ;;  %v478_v33 = vld [vmem:[%s5103_s17 + $0x568] sm:$0xff]  ;;  %v463_v34 = vld [vmem:[%s5103_s17 + $0x4f0] sm:$0xff] }
  0x7f   : > { %4452 = vmatpush3.bf16.xpose.msk.msra.mxu1 %vm5107_vm1, %v4450_v41  ;;  %4407 = vmatprep.subr.msk.bf16.mxu0 %vm5107_vm1, %v4405_v42  ;;  %v4483_v41 = vpack.c.bf16 %v454_v36, %v453_v35  ;;  %v4531_v42 = vpack.c.bf16 %v486_v38, %v485_v37  ;;  %v464_v35 = vld [vmem:[%s5103_s17 + $0x4f8] sm:$0xff]  ;;  %v495_v36 = vld [vmem:[%s5103_s17 + $0x5f0] sm:$0xff] }
  0x80   : > { %4455 = vmatprep.subr.msk.bf16.mxu1 %vm5107_vm1, %v4453_v43  ;;  %v437_v43 = vld [vmem:[%s5103_s17 + $0x420] sm:$0xff]  ;;  %v496_v37 = vld [vmem:[%s5103_s17 + $0x5f8] sm:$0xff] }
  0x81   : > { %v4486_v51 = vpack.c.bf16 %v438_v44, %v437_v43  ;;  %v448_v43 = vld [vmem:[%s5103_s17 + $0x478] sm:$0xff]  ;;  %v479_v44 = vld [vmem:[%s5103_s17 + $0x570] sm:$0xff] }
  0x86   : > { %4410 = vmatpush3.bf16.xpose.msk.msra.mxu0 %vm5107_vm1, %v4408_v52  ;;  %v4534_v52 = vpack.c.bf16 %v470_v46, %v469_v45  ;;  %v480_v45 = vld [vmem:[%s5103_s17 + $0x578] sm:$0xff]  ;;  %v513_v46 = vld [vmem:[%s5103_s17 + $0x680] sm:$0xff] }
  0x87   : > { %4458 = vmatpush3.bf16.xpose.msk.msra.mxu1 %vm5107_vm1, %v4456_v53  ;;  %4413 = vmatprep.subr.msk.bf16.mxu0 %vm5107_vm1, %v4411_v54  ;;  %v4489_v53 = vpack.c.bf16 %v456_v48, %v455_v47  ;;  %v4537_v54 = vpack.c.bf16 %v488_v50, %v487_v49  ;;  %v514_v47 = vld [vmem:[%s5103_s17 + $0x688] sm:$0xff]  ;;  %v545_v48 = vld [vmem:[%s5103_s17 + $0x780] sm:$0xff] }
  0x88   : > { %4461 = vmatprep.subr.msk.bf16.mxu1 %vm5107_vm1, %v4459_v56  ;;  %v439_v56 = vld [vmem:[%s5103_s17 + $0x430] sm:$0xff]  ;;  %v546_v49 = vld [vmem:[%s5103_s17 + $0x788] sm:$0xff] }
  0x89   : > { %v4492_v2 = vpack.c.bf16 %v440_v57, %v439_v56  ;;  %v498_v56 = vld [vmem:[%s5103_s17 + $0x608] sm:$0xff]  ;;  %v529_v57 = vld [vmem:[%s5103_s17 + $0x700] sm:$0xff] }
  0x8e   : > { %4416 = vmatpush3.bf16.xpose.msk.msra.mxu0 %vm5107_vm1, %v4414_v3  ;;  %v4540_v3 = vpack.c.bf16 %v472_v59, %v471_v58  ;;  %v530_v58 = vld [vmem:[%s5103_s17 + $0x708] sm:$0xff]  ;;  %v515_v59 = vld [vmem:[%s5103_s17 + $0x690] sm:$0xff] }
  0x8f   : > { %4464 = vmatpush3.bf16.xpose.msk.msra.mxu1 %vm5107_vm1, %v4462_v4  ;;  %4419 = vmatprep.subr.msk.bf16.mxu0 %vm5107_vm1, %v4417_v5  ;;  %v4495_v4 = vpack.c.bf16 %v458_v61, %v457_v60  ;;  %v4543_v5 = vpack.c.bf16 %v490_v63, %v489_v62  ;;  %v516_v60 = vld [vmem:[%s5103_s17 + $0x698] sm:$0xff]  ;;  %v547_v62 = vld [vmem:[%s5103_s17 + $0x790] sm:$0xff] }
  0x90   : > { %4467 = vmatprep.subr.msk.bf16.mxu1 %vm5107_vm1, %v4465_v6  ;;  %v441_v6 = vld [vmem:[%s5103_s17 + $0x440] sm:$0xff]  ;;  %v548_v63 = vld [vmem:[%s5103_s17 + $0x798] sm:$0xff] }
  0x91   : > { %v4498_v14 = vpack.c.bf16 %v442_v7, %v441_v6  ;;  %v500_v6 = vld [vmem:[%s5103_s17 + $0x618] sm:$0xff]  ;;  %v531_v7 = vld [vmem:[%s5103_s17 + $0x710] sm:$0xff] }
  0x96   : > { %4422 = vmatpush3.bf16.xpose.msk.msra.mxu0 %vm5107_vm1, %v4420_v15  ;;  %v4546_v15 = vpack.c.bf16 %v474_v9, %v473_v8  ;;  %v532_v8 = vld [vmem:[%s5103_s17 + $0x718] sm:$0xff]  ;;  %v517_v9 = vld [vmem:[%s5103_s17 + $0x6a0] sm:$0xff] }
  0x97   : > { %4470 = vmatpush3.bf16.xpose.msk.msra.mxu1 %vm5107_vm1, %v4468_v16  ;;  %4473 = vmatprep.subr.msk.bf16.mxu0 %vm5107_vm1, %v4471_v17  ;;  %v4501_v16 = vpack.c.bf16 %v460_v11, %v459_v10  ;;  %v4549_v17 = vpack.c.bf16 %v492_v13, %v491_v12  ;;  %v518_v10 = vld [vmem:[%s5103_s17 + $0x6a8] sm:$0xff]  ;;  %v549_v11 = vld [vmem:[%s5103_s17 + $0x7a0] sm:$0xff] }
  0x98   : > { %4521 = vmatprep.subr.msk.bf16.mxu1 %vm5107_vm1, %v4519_v18  ;;  %v443_v18 = vld [vmem:[%s5103_s17 + $0x450] sm:$0xff]  ;;  %v550_v12 = vld [vmem:[%s5103_s17 + $0x7a8] sm:$0xff] }
  0x99   : > { %v4504_v26 = vpack.c.bf16 %v444_v19, %v443_v18  ;;  %v502_v18 = vld [vmem:[%s5103_s17 + $0x628] sm:$0xff]  ;;  %v533_v19 = vld [vmem:[%s5103_s17 + $0x720] sm:$0xff] }
  0x9d   : > { %4096 = vmatmul.mubr.msk.f32.vlgmr.msra.gmra.mrb[4].mxu0 %vm573_vm0, %v5094_v0 }
  0x9e   : > { %4132 = vmatmul.mubr.msk.f32.vlgmr.msra.gmra.mrb[4].mxu1 %vm573_vm0, %v5094_v0  ;;  %4476 = vmatpush3.bf16.xpose.msk.msra.mxu0 %vm5107_vm1, %v4474_v25  ;;  %v494_v25 = vld [vmem:[%s5103_s17 + $0x5e8] sm:$0xff] }
  0x9f   : > { %4524 = vmatpush3.bf16.xpose.msk.msra.mxu1 %vm5107_vm1, %v4522_v28  ;;  %4097 = vmatprep.mubr.msk.f32.mxu0 %vm573_vm0, %v5264_v55  ;;  %v4507_v28 = vpack.c.bf16 %v462_v23, %v461_v22  ;;  %v551_v22 = vld [vmem:[%s5103_s17 + $0x7b0] sm:$0xff]  ;;  %v552_v23 = vld [vmem:[%s5103_s17 + $0x7b8] sm:$0xff] }
  0xa0   : > { %4133 = vmatprep.mubr.msk.f32.mxu1 %vm573_vm0, %v5264_v55  ;;  %4479 = vmatprep.subr.msk.bf16.mxu0 %vm5107_vm1, %v4477_v29  ;;  %v4555_v29 = vpack.c.bf16 %v494_v25, %v493_v24 }
  0xa1   : > { %4098 = vmatmul.mubr.msk.f32.gmra.mrb[6].mxu0 %vm573_vm0, %v5264_v55  ;;  %4527 = vmatprep.subr.msk.bf16.mxu1 %vm5107_vm1, %v4525_v30  ;;  %v445_v30 = vld [vmem:[%s5103_s17 + $0x460] sm:$0xff] }
  0xa2   : > { %4134 = vmatmul.mubr.msk.f32.gmra.mrb[6].mxu1 %vm573_vm0, %v5264_v55  ;;  %4167 = vmatprep.mubr.msk.f32.mxu0 %vm573_vm0, %v5094_v0  ;;  %v4510_v38 = vpack.c.bf16 %v446_v31, %v445_v30  ;;  %v535_v30 = vld [vmem:[%s5103_s17 + $0x730] sm:$0xff]  ;;  %v536_v31 = vld [vmem:[%s5103_s17 + $0x738] sm:$0xff] }
  0xa3   : > { %4203 = vmatprep.mubr.msk.f32.mxu1 %vm573_vm0, %v5094_v0 }
  0xa6   : > { %4482 = vmatpush3.bf16.xpose.msk.msra.mxu0 %vm5107_vm1, %v4480_v39  ;;  %v4558_v39 = vpack.c.bf16 %v478_v33, %v477_v32  ;;  %v521_v32 = vld [vmem:[%s5103_s17 + $0x6c0] sm:$0xff]  ;;  %v522_v33 = vld [vmem:[%s5103_s17 + $0x6c8] sm:$0xff] }
  0xa7   : > { %4530 = vmatpush3.bf16.xpose.msk.msra.mxu1 %vm5107_vm1, %v4528_v40  ;;  %4485 = vmatprep.subr.msk.bf16.mxu0 %vm5107_vm1, %v4483_v41  ;;  %v4513_v40 = vpack.c.bf16 %v464_v35, %v463_v34  ;;  %v4561_v41 = vpack.c.bf16 %v496_v37, %v495_v36  ;;  %v553_v34 = vld [vmem:[%s5103_s17 + $0x7c0] sm:$0xff]  ;;  %v554_v35 = vld [vmem:[%s5103_s17 + $0x7c8] sm:$0xff]  ;;  %v4636_v37 = vpack.c.bf16 %v536_v31, %v535_v30 }
  0xa8   : > { %4533 = vmatprep.subr.msk.bf16.mxu1 %vm5107_vm1, %v4531_v42  ;;  %v447_v42 = vld [vmem:[%s5103_s17 + $0x470] sm:$0xff] }
  0xa9   : > { %v4516_v50 = vpack.c.bf16 %v448_v43, %v447_v42  ;;  %v537_v42 = vld [vmem:[%s5103_s17 + $0x740] sm:$0xff]  ;;  %v538_v43 = vld [vmem:[%s5103_s17 + $0x748] sm:$0xff] }
  0xae   : > { %4488 = vmatpush3.bf16.xpose.msk.msra.mxu0 %vm5107_vm1, %v4486_v51  ;;  %v4564_v51 = vpack.c.bf16 %v480_v45, %v479_v44  ;;  %v523_v44 = vld [vmem:[%s5103_s17 + $0x6d0] sm:$0xff]  ;;  %v524_v45 = vld [vmem:[%s5103_s17 + $0x6d8] sm:$0xff] }
  0xaf   : > { %4536 = vmatpush3.bf16.xpose.msk.msra.mxu1 %vm5107_vm1, %v4534_v52  ;;  %4491 = vmatprep.subr.msk.bf16.mxu0 %vm5107_vm1, %v4489_v53  ;;  %v4567_v52 = vpack.c.bf16 %v514_v47, %v513_v46  ;;  %v4615_v53 = vpack.c.bf16 %v546_v49, %v545_v48  ;;  %v555_v46 = vld [vmem:[%s5103_s17 + $0x7d0] sm:$0xff]  ;;  %v556_v47 = vld [vmem:[%s5103_s17 + $0x7d8] sm:$0xff]  ;;  %v4642_v49 = vpack.c.bf16 %v538_v43, %v537_v42 }
  0xb0   : > { %4539 = vmatprep.subr.msk.bf16.mxu1 %vm5107_vm1, %v4537_v54  ;;  %v497_v54 = vld [vmem:[%s5103_s17 + $0x600] sm:$0xff] }
  0xb1   : > { %v4570_v61 = vpack.c.bf16 %v498_v56, %v497_v54  ;;  %v539_v54 = vld [vmem:[%s5103_s17 + $0x750] sm:$0xff]  ;;  %v540_v56 = vld [vmem:[%s5103_s17 + $0x758] sm:$0xff] }
  0xb6   : > { %4494 = vmatpush3.bf16.xpose.msk.msra.mxu0 %vm5107_vm1, %v4492_v2  ;;  %v4618_v2 = vpack.c.bf16 %v530_v58, %v529_v57  ;;  %v525_v57 = vld [vmem:[%s5103_s17 + $0x6e0] sm:$0xff]  ;;  %v526_v58 = vld [vmem:[%s5103_s17 + $0x6e8] sm:$0xff] }
  0xb7   : > { %4542 = vmatpush3.bf16.xpose.msk.msra.mxu1 %vm5107_vm1, %v4540_v3  ;;  %4497 = vmatprep.subr.msk.bf16.mxu0 %vm5107_vm1, %v4495_v4  ;;  %v4573_v3 = vpack.c.bf16 %v516_v60, %v515_v59  ;;  %v4621_v4 = vpack.c.bf16 %v548_v63, %v547_v62  ;;  %v557_v59 = vld [vmem:[%s5103_s17 + $0x7e0] sm:$0xff]  ;;  %v558_v60 = vld [vmem:[%s5103_s17 + $0x7e8] sm:$0xff]  ;;  %v4648_v62 = vpack.c.bf16 %v540_v56, %v539_v54 }
  0xb8   : > { %4545 = vmatprep.subr.msk.bf16.mxu1 %vm5107_vm1, %v4543_v5  ;;  %v499_v5 = vld [vmem:[%s5103_s17 + $0x610] sm:$0xff]  ;;  %v4603_v63 = vpack.c.bf16 %v526_v58, %v525_v57 }
  0xb9   : > { %v4576_v13 = vpack.c.bf16 %v500_v6, %v499_v5  ;;  %v541_v5 = vld [vmem:[%s5103_s17 + $0x760] sm:$0xff]  ;;  %v542_v6 = vld [vmem:[%s5103_s17 + $0x768] sm:$0xff] }
  0xbe   : > { %4500 = vmatpush3.bf16.xpose.msk.msra.mxu0 %vm5107_vm1, %v4498_v14  ;;  %v4624_v14 = vpack.c.bf16 %v532_v8, %v531_v7  ;;  %v527_v7 = vld [vmem:[%s5103_s17 + $0x6f0] sm:$0xff]  ;;  %v528_v8 = vld [vmem:[%s5103_s17 + $0x6f8] sm:$0xff] }
  0xbf   : > { %4548 = vmatpush3.bf16.xpose.msk.msra.mxu1 %vm5107_vm1, %v4546_v15  ;;  %4503 = vmatprep.subr.msk.bf16.mxu0 %vm5107_vm1, %v4501_v16  ;;  %v4579_v15 = vpack.c.bf16 %v518_v10, %v517_v9  ;;  %v4627_v16 = vpack.c.bf16 %v550_v12, %v549_v11  ;;  %v559_v9 = vld [vmem:[%s5103_s17 + $0x7f0] sm:$0xff]  ;;  %v560_v10 = vld [vmem:[%s5103_s17 + $0x7f8] sm:$0xff]  ;;  %v4654_v12 = vpack.c.bf16 %v542_v6, %v541_v5 }
  0xc0   : > { %4551 = vmatprep.subr.msk.bf16.mxu1 %vm5107_vm1, %v4549_v17  ;;  %v501_v17 = vld [vmem:[%s5103_s17 + $0x620] sm:$0xff] }
  0xc1   : > { %v4582_v24 = vpack.c.bf16 %v502_v18, %v501_v17  ;;  %v543_v17 = vld [vmem:[%s5103_s17 + $0x770] sm:$0xff]  ;;  %v544_v18 = vld [vmem:[%s5103_s17 + $0x778] sm:$0xff] }
  0xc6   : > { %4506 = vmatpush3.bf16.xpose.msk.msra.mxu0 %vm5107_vm1, %v4504_v26  ;;  %v4585_v26 = vpack.c.bf16 %v520_v21, %v519_v20  ;;  %v4915_v20 = vld [vmem:[%s6093_s2] sm:$0xff]  ;;  %v5697_v21 = vpop.permute.xlu0 %565 }
  0xc7   : > { %4554 = vmatpush3.bf16.xpose.msk.msra.mxu1 %vm5107_vm1, %v4552_v27  ;;  %4509 = vmatprep.subr.msk.bf16.mxu0 %vm5107_vm1, %v4507_v28  ;;  %v4633_v27 = vpack.c.bf16 %v552_v23, %v551_v22  ;;  %v503_v28 = vld [vmem:[%s5103_s17 + $0x630] sm:$0xff] }
  0xc8   : > { %4557 = vmatprep.subr.msk.bf16.mxu1 %vm5107_vm1, %v4555_v29  ;;  %v504_v29 = vld [vmem:[%s5103_s17 + $0x638] sm:$0xff] }
  0xc9   : > { %v4588_v36 = vpack.c.bf16 %v504_v29, %v503_v28 }
  0xca   : > { %v5712_v30 = vpop.permute.xlu0 %570 }
  0xce   : > { %4512 = vmatpush3.bf16.xpose.msk.msra.mxu0 %vm5107_vm1, %v4510_v38  ;;  %v4591_v38 = vpack.c.bf16 %v522_v33, %v521_v32 }
  0xcf   : > { %4560 = vmatpush3.bf16.xpose.msk.msra.mxu1 %vm5107_vm1, %v4558_v39  ;;  %4515 = vmatprep.subr.msk.bf16.mxu0 %vm5107_vm1, %v4513_v40  ;;  %v4639_v39 = vpack.c.bf16 %v554_v35, %v553_v34  ;;  %v505_v40 = vld [vmem:[%s5103_s17 + $0x640] sm:$0xff] }
  0xd0   : > { %4563 = vmatprep.subr.msk.bf16.mxu1 %vm5107_vm1, %v4561_v41  ;;  %v506_v41 = vld [vmem:[%s5103_s17 + $0x648] sm:$0xff] }
  0xd1   : > { %v4594_v48 = vpack.c.bf16 %v506_v41, %v505_v40 }
  0xd6   : > { %4518 = vmatpush3.bf16.xpose.msk.msra.mxu0 %vm5107_vm1, %v4516_v50  ;;  %v4597_v50 = vpack.c.bf16 %v524_v45, %v523_v44 }
  0xd7   : > { %4566 = vmatpush3.bf16.xpose.msk.msra.mxu1 %vm5107_vm1, %v4564_v51  ;;  %4569 = vmatprep.subr.msk.bf16.mxu0 %vm5107_vm1, %v4567_v52  ;;  %v4645_v51 = vpack.c.bf16 %v556_v47, %v555_v46  ;;  %v507_v52 = vld [vmem:[%s5103_s17 + $0x650] sm:$0xff] }
  0xd8   : > { %4617 = vmatprep.subr.msk.bf16.mxu1 %vm5107_vm1, %v4615_v53  ;;  %v508_v53 = vld [vmem:[%s5103_s17 + $0x658] sm:$0xff] }
  0xdd   : > { %4168 = vmatmul.mubr.msk.f32.vlgmr.msra.gmra.mrb[8].mxu0 %vm573_vm0, %v5094_v0 }
  0xde   : > { %4204 = vmatmul.mubr.msk.f32.vlgmr.msra.gmra.mrb[8].mxu1 %vm573_vm0, %v5094_v0  ;;  %4572 = vmatpush3.bf16.xpose.msk.msra.mxu0 %vm5107_vm1, %v4570_v61  ;;  %v4600_v61 = vpack.c.bf16 %v508_v53, %v507_v52 }
  0xdf   : > { %4620 = vmatpush3.bf16.xpose.msk.msra.mxu1 %vm5107_vm1, %v4618_v2  ;;  %4169 = vmatprep.mubr.msk.f32.mxu0 %vm573_vm0, %v5264_v55  ;;  %v4651_v2 = vpack.c.bf16 %v558_v60, %v557_v59 }
  0xe0   : > { %4205 = vmatprep.mubr.msk.f32.mxu1 %vm573_vm0, %v5264_v55  ;;  %4575 = vmatprep.subr.msk.bf16.mxu0 %vm5107_vm1, %v4573_v3  ;;  %v509_v3 = vld [vmem:[%s5103_s17 + $0x660] sm:$0xff] }
  0xe1   : > { %4170 = vmatmul.mubr.msk.f32.gmra.mrb[10].mxu0 %vm573_vm0, %v5264_v55  ;;  %4623 = vmatprep.subr.msk.bf16.mxu1 %vm5107_vm1, %v4621_v4  ;;  %v510_v4 = vld [vmem:[%s5103_s17 + $0x668] sm:$0xff] }
  0xe2   : > { %4206 = vmatmul.mubr.msk.f32.gmra.mrb[10].mxu1 %vm573_vm0, %v5264_v55  ;;  %4239 = vmatprep.mubr.msk.f32.mxu0 %vm573_vm0, %v5094_v0  ;;  %v4606_v11 = vpack.c.bf16 %v510_v4, %v509_v3 }
  0xe3   : > { %4275 = vmatprep.mubr.msk.f32.mxu1 %vm573_vm0, %v5094_v0  ;;  %v534_v0 = vld [vmem:[%s5103_s17 + $0x728] sm:$0xff] }
  0xe4   : > { %v4630_v25 = vpack.c.bf16 %v534_v0, %v533_v19  ;;  %v4660_v0 = vpack.c.bf16 %v544_v18, %v543_v17 }
  0xe6   : > { %4578 = vmatpush3.bf16.xpose.msk.msra.mxu0 %vm5107_vm1, %v4576_v13  ;;  %v4609_v13 = vpack.c.bf16 %v528_v8, %v527_v7 }
  0xe7   : > { %4626 = vmatpush3.bf16.xpose.msk.msra.mxu1 %vm5107_vm1, %v4624_v14  ;;  %4581 = vmatprep.subr.msk.bf16.mxu0 %vm5107_vm1, %v4579_v15  ;;  %v4657_v14 = vpack.c.bf16 %v560_v10, %v559_v9  ;;  %v511_v15 = vld [vmem:[%s5103_s17 + $0x670] sm:$0xff] }
  0xe8   : > { %4629 = vmatprep.subr.msk.bf16.mxu1 %vm5107_vm1, %v4627_v16  ;;  %v512_v16 = vld [vmem:[%s5103_s17 + $0x678] sm:$0xff]  ;;  %s6043_s17 = scalar_lea.hbm %s6097_s6, %s3988_s13 }
  0xe9   : > { %v4612_v19 = vpack.c.bf16 %v512_v16, %v511_v15 }
  0xee   : > { %4584 = vmatpush3.bf16.xpose.msk.msra.mxu0 %vm5107_vm1, %v4582_v24 }
  0xef   : > { %4632 = vmatpush3.bf16.xpose.msk.msra.mxu1 %vm5107_vm1, %v4630_v25  ;;  %4587 = vmatprep.subr.msk.bf16.mxu0 %vm5107_vm1, %v4585_v26 }
  0xf0   : > { %4635 = vmatprep.subr.msk.bf16.mxu1 %vm5107_vm1, %v4633_v27 }
  0xf6   : > { %4590 = vmatpush3.bf16.xpose.msk.msra.mxu0 %vm5107_vm1, %v4588_v36 }
  0xf7   : > { %4638 = vmatpush3.bf16.xpose.msk.msra.mxu1 %vm5107_vm1, %v4636_v37  ;;  %4593 = vmatprep.subr.msk.bf16.mxu0 %vm5107_vm1, %v4591_v38 }
  0xf8   : > { %4641 = vmatprep.subr.msk.bf16.mxu1 %vm5107_vm1, %v4639_v39 }
  0xfe   : > { %4596 = vmatpush3.bf16.xpose.msk.msra.mxu0 %vm5107_vm1, %v4594_v48 }
  0xff   : > { %4644 = vmatpush3.bf16.xpose.msk.msra.mxu1 %vm5107_vm1, %v4642_v49  ;;  %4599 = vmatprep.subr.msk.bf16.mxu0 %vm5107_vm1, %v4597_v50 }
 0x100   : > { %4647 = vmatprep.subr.msk.bf16.mxu1 %vm5107_vm1, %v4645_v51 }
 0x106   : > { %4602 = vmatpush3.bf16.xpose.msk.msra.mxu0 %vm5107_vm1, %v4600_v61 }
 0x107   : > { %4650 = vmatpush3.bf16.xpose.msk.msra.mxu1 %vm5107_vm1, %v4648_v62  ;;  %4605 = vmatprep.subr.msk.bf16.mxu0 %vm5107_vm1, %v4603_v63 }
 0x108   : > { %4653 = vmatprep.subr.msk.bf16.mxu1 %vm5107_vm1, %v4651_v2 }
 0x10e   : > { %4608 = vmatpush3.bf16.xpose.msk.msra.mxu0 %vm5107_vm1, %v4606_v11 }
 0x10f   : > { %4656 = vmatpush3.bf16.xpose.msk.msra.mxu1 %vm5107_vm1, %v4654_v12  ;;  %4611 = vmatprep.subr.msk.bf16.mxu0 %vm5107_vm1, %v4609_v13 }
 0x110   : > { %4659 = vmatprep.subr.msk.bf16.mxu1 %vm5107_vm1, %v4657_v14 }
 0x116   : > { %4614 = vmatpush3.bf16.xpose.msk.msra.mxu0 %vm5107_vm1, %v4612_v19 }
 0x117   : > { %4662 = vmatpush3.bf16.xpose.msk.msra.mxu1 %vm5107_vm1, %v4660_v0 }
 0x11d   : > { %4240 = vmatmul.mubr.msk.f32.vlgmr.msra.gmra.mrb[12].mxu0 %vm573_vm0, %v4915_v20 }
 0x11e   : > { %4276 = vmatmul.mubr.msk.f32.vlgmr.msra.gmra.mrb[12].mxu1 %vm573_vm0, %v4915_v20  ;;  %4241 = vmatprep.mubr.msk.f32.mxu0 %vm573_vm0, %v5264_v55 }
 0x11f   : > { %4277 = vmatprep.mubr.msk.f32.mxu1 %vm573_vm0, %v5264_v55 }
 0x121   : > { %4242 = vmatmul.mubr.msk.f32.gmra.mrb[14].mxu0 %vm573_vm0, %v5264_v55 }
 0x122   : > { %4278 = vmatmul.mubr.msk.f32.gmra.mrb[14].mxu1 %vm573_vm0, %v5264_v55  ;;  %2337 = vmatprep.mubr.f32.mxu0 %v4997_v1 }
 0x123   : > { %2414 = vmatprep.mubr.f32.mxu1 %v4997_v1 }
 0x130   : > { %v1414_v22 = vpop.f32.mrb[0].mxu0 }
 0x131   : > { %v5700_v23 = vadd.f32 %v1414_v22, %v5697_v21  ;;  %v1491_v24 = vpop.f32.mrb[0].mxu1  ;;  %v1416_v25 = vpop.f32.mrb[1].mxu0 }
 0x132   : > { %v5703_v26 = vadd.f32 %v1491_v24, %v5697_v21  ;;  %v5706_v27 = vadd.f32 %v1416_v25, %v5697_v21  ;;  %v1493_v55 = vpop.f32.mrb[1].mxu1 }
 0x133   : > { %v1996_v28 = vand.u32 2147483647, %v5700_v23  ;;  %v5710_v29 = vadd.f32 %v1493_v55, %v5697_v21 }
 0x134   : > { %v1998_v31 = vand.u32 2147483647, %v5703_v26  ;;  %v1997_v32 = vand.u32 2147483647, %v5706_v27  ;;  %v1420_v35 = vpop.f32.mrb[2].mxu0 }
 0x135   : > { %v2028_v33 = vsub.f32 0.0, %v1996_v28  ;;  %v1999_v34 = vand.u32 2147483647, %v5710_v29  ;;  %v1497_v36 = vpop.f32.mrb[2].mxu1  ;;  %v5718_v39 = vadd.f32 %v1420_v35, %v5712_v30  ;;  %v1422_v41 = vpop.f32.mrb[3].mxu0 }
 0x136   : > { %v2030_v37 = vsub.f32 0.0, %v1998_v31  ;;  %v2029_v38 = vsub.f32 0.0, %v1997_v32  ;;  %v5721_v40 = vadd.f32 %v1497_v36, %v5712_v30  ;;  %v1499_v42 = vpop.f32.mrb[3].mxu1  ;;  %v5724_v45 = vadd.f32 %v1422_v41, %v5712_v30 }
 0x137   : > { %v2060_v43 = vmul.f32 1.442695, %v2028_v33  ;;  %v2031_v44 = vsub.f32 0.0, %v1999_v34  ;;  %v5727_v46 = vadd.f32 %v1499_v42, %v5712_v30  ;;  %v2012_v50 = vand.u32 2147483647, %v5718_v39 }
 0x138   : > { %v2064_v47 = vmul.f32 1.442695, %v2030_v37  ;;  %v2062_v48 = vmul.f32 1.442695, %v2029_v38  ;;  %v2014_v51 = vand.u32 2147483647, %v5721_v40 }
 0x139   : > { %4787 = vpow2.f32 %v2060_v43  ;;  %v2066_v49 = vmul.f32 1.442695, %v2031_v44  ;;  %v2013_v52 = vand.u32 2147483647, %v5724_v45  ;;  %v2044_v53 = vsub.f32 0.0, %v2012_v50 }
 0x13a   : > { %4789 = vpow2.f32 %v2064_v47  ;;  %v2046_v54 = vsub.f32 0.0, %v2014_v51  ;;  %v2015_v56 = vand.u32 2147483647, %v5727_v46  ;;  %v1980_v22 = vmax.f32 %v5718_v39, 0.0 }
 0x13b   : > { %4791 = vpow2.f32 %v2062_v48  ;;  %v2045_v57 = vsub.f32 0.0, %v2013_v52  ;;  %v2092_v58 = vmul.f32 1.442695, %v2044_v53  ;;  %v1982_v55 = vmax.f32 %v5721_v40, 0.0 }
 0x13c   : > { %4793 = vpow2.f32 %v2066_v49  ;;  %v2096_v59 = vmul.f32 1.442695, %v2046_v54  ;;  %v2047_v60 = vsub.f32 0.0, %v2015_v56  ;;  %v1964_v31 = vmax.f32 %v5700_v23, 0.0 }
 0x13d   : > { %v2094_v61 = vmul.f32 1.442695, %v2045_v57  ;;  %4795 = vpow2.f32 %v2092_v58  ;;  %v1981_v34 = vmax.f32 %v5724_v45, 0.0  ;;  %v1966_v36 = vmax.f32 %v5703_v26, 0.0 }
 0x13e   : > { %v2098_v62 = vmul.f32 1.442695, %v2047_v60  ;;  %4797 = vpow2.f32 %v2096_v59  ;;  %v1983_v41 = vmax.f32 %v5727_v46, 0.0  ;;  %v1965_v43 = vmax.f32 %v5706_v27, 0.0  ;;  %v5744_v27 = vld [vmem:[%s6095_s4] sm:$0xff] }
 0x13f   : > { %4799 = vpow2.f32 %v2094_v61  ;;  %v1967_v23 = vmax.f32 %v5710_v29, 0.0  ;;  %v5754_v29 = vld [vmem:[%s6095_s4 + $0x8] sm:$0xff] }
 0x140   : > { %4801 = vpow2.f32 %v2098_v62 }
 0x143   : > { %v4788_v63 = vpop.eup %4787 }
 0x144   : > { %v4790_v2 = vpop.eup %4789  ;;  %v2124_v3 = vadd.f32 1.0, %v4788_v63 }
 0x145   : > { %v4792_v4 = vpop.eup %4791  ;;  %v2126_v5 = vadd.f32 1.0, %v4790_v2 }
 0x146   : > { %v4794_v6 = vpop.eup %4793  ;;  %v2125_v7 = vadd.f32 1.0, %v4792_v4  ;;  %4803 = vlog2.f32 %v2124_v3 }
 0x147   : > { %v2127_v8 = vadd.f32 1.0, %v4794_v6  ;;  %v4796_v9 = vpop.eup %4795  ;;  %4805 = vlog2.f32 %v2126_v5 }
 0x148   : > { %v4798_v10 = vpop.eup %4797  ;;  %4807 = vlog2.f32 %v2125_v7  ;;  %v2140_v11 = vadd.f32 1.0, %v4796_v9 }
 0x149   : > { %v4800_v12 = vpop.eup %4799  ;;  %4809 = vlog2.f32 %v2127_v8  ;;  %v2142_v13 = vadd.f32 1.0, %v4798_v10 }
 0x14a   : > { %v4802_v14 = vpop.eup %4801  ;;  %4811 = vlog2.f32 %v2140_v11  ;;  %v2141_v15 = vadd.f32 1.0, %v4800_v12 }
 0x14b   : > { %4813 = vlog2.f32 %v2142_v13  ;;  %v2143_v16 = vadd.f32 1.0, %v4802_v14 }
 0x14c   : > { %4815 = vlog2.f32 %v2141_v15 }
 0x14d   : > { %4817 = vlog2.f32 %v2143_v16 }
 0x150   : > { %v4804_v17 = vpop.eup %4803 }
 0x151   : > { %v4806_v18 = vpop.eup %4805  ;;  %v2157_v20 = vmul.f32 0.6931472, %v4804_v17 }
 0x152   : > { %v4808_v19 = vpop.eup %4807  ;;  %v2161_v25 = vmul.f32 0.6931472, %v4806_v18 }
 0x153   : > { %v4810_v0 = vpop.eup %4809  ;;  %v2159_v32 = vmul.f32 0.6931472, %v4808_v19  ;;  %v2220_v39 = vadd.f32 %v2157_v20, %v1964_v31 }
 0x154   : > { %v4812_v24 = vpop.eup %4811  ;;  %v2163_v37 = vmul.f32 0.6931472, %v4810_v0  ;;  %v2222_v47 = vadd.f32 %v2161_v25, %v1966_v36 }
 0x155   : > { %v4814_v28 = vpop.eup %4813  ;;  %v2189_v33 = vmul.f32 0.6931472, %v4812_v24  ;;  %v2221_v50 = vadd.f32 %v2159_v32, %v1965_v43 }
 0x156   : > { %v4816_v35 = vpop.eup %4815  ;;  %v2193_v38 = vmul.f32 0.6931472, %v4814_v28  ;;  %v2223_v52 = vadd.f32 %v2163_v37, %v1967_v23 }
 0x157   : > { %v4818_v42 = vpop.eup %4817  ;;  %v2236_v44 = vadd.f32 %v2189_v33, %v1980_v22  ;;  %v2191_v40 = vmul.f32 0.6931472, %v4816_v35 }
 0x158   : > { %v2238_v48 = vadd.f32 %v2193_v38, %v1982_v55  ;;  %v2195_v49 = vmul.f32 0.6931472, %v4818_v42 }
 0x159   : > { %v4665_v45 = vpack.c.bf16 %v2236_v44, %v2220_v39  ;;  %v2237_v51 = vadd.f32 %v2191_v40, %v1981_v34 }
 0x15a   : > { %v4669_v26 = vpack.c.bf16 %v2238_v48, %v2222_v47  ;;  %v2239_v53 = vadd.f32 %v2195_v49, %v1983_v41 }
 0x15b   : > { %v4663_v54 = vpack.c.bf16 %v2237_v51, %v2221_v50 }
 0x15c   : > { %v4667_v56 = vpack.c.bf16 %v2239_v53, %v2223_v52 }
 0x15d   : > { %4664 = vmatprep.subr.bf16.mxu0 %v4663_v54 }
 0x15e   : > { %4668 = vmatprep.subr.bf16.mxu1 %v4667_v56  ;;  %4666 = vmatpush1.bf16.msra.mxu0 %v4665_v45 }
 0x15f   : > { %4670 = vmatpush1.bf16.msra.mxu1 %v4669_v26 }
 0x161   : > { %3939 = vmatmul.mubr.msk.f32.vlgmr.msra.gmra.mrb[16].mxu0 %vm301_vm2, %v5744_v27 }
 0x162   : > { %3941 = vmatmul.mubr.msk.f32.vlgmr.msra.gmra.mrb[16].mxu1 %vm301_vm2, %v5744_v27  ;;  %2343 = vmatprep.mubr.f32.mxu0 %v4997_v1 }
 0x163   : > { %2420 = vmatprep.mubr.f32.mxu1 %v4997_v1 }
 0x165   : > { %3940 = vmatmul.mubr.msk.f32.gmra.mrb[18].mxu0 %vm301_vm2, %v5754_v29 }
 0x166   : > { %3942 = vmatmul.mubr.msk.f32.gmra.mrb[18].mxu1 %vm301_vm2, %v5754_v29  ;;  %2491 = vmatprep.mubr.f32.mxu0 %v4997_v1 }
 0x167   : > { %2568 = vmatprep.mubr.f32.mxu1 %v4997_v1 }
 0x170   : > { %v1568_v46 = vpop.f32.mrb[4].mxu0 }
 0x171   : > { %v5764_v57 = vadd.f32 %v1568_v46, %v5697_v21  ;;  %v1645_v58 = vpop.f32.mrb[4].mxu1  ;;  %v1570_v59 = vpop.f32.mrb[5].mxu0 }
 0x172   : > { %v5767_v60 = vadd.f32 %v1645_v58, %v5697_v21  ;;  %v5770_v61 = vadd.f32 %v1570_v59, %v5697_v21  ;;  %v1647_v62 = vpop.f32.mrb[5].mxu1 }
 0x173   : > { %v2000_v63 = vand.u32 2147483647, %v5764_v57  ;;  %v5774_v2 = vadd.f32 %v1647_v62, %v5697_v21 }
 0x174   : > { %v2002_v3 = vand.u32 2147483647, %v5767_v60  ;;  %v2001_v4 = vand.u32 2147483647, %v5770_v61  ;;  %v1574_v7 = vpop.f32.mrb[6].mxu0 }
 0x175   : > { %v2032_v5 = vsub.f32 0.0, %v2000_v63  ;;  %v2003_v6 = vand.u32 2147483647, %v5774_v2  ;;  %v1651_v8 = vpop.f32.mrb[6].mxu1  ;;  %v5780_v11 = vadd.f32 %v1574_v7, %v5712_v30  ;;  %v1576_v13 = vpop.f32.mrb[7].mxu0 }
 0x176   : > { %v2034_v9 = vsub.f32 0.0, %v2002_v3  ;;  %v2033_v10 = vsub.f32 0.0, %v2001_v4  ;;  %v5783_v12 = vadd.f32 %v1651_v8, %v5712_v30  ;;  %v1653_v14 = vpop.f32.mrb[7].mxu1  ;;  %v5786_v17 = vadd.f32 %v1576_v13, %v5712_v30 }
 0x177   : > { %v2068_v15 = vmul.f32 1.442695, %v2032_v5  ;;  %v2035_v16 = vsub.f32 0.0, %v2003_v6  ;;  %v5789_v18 = vadd.f32 %v1653_v14, %v5712_v30  ;;  %v2016_v22 = vand.u32 2147483647, %v5780_v11 }
 0x178   : > { %v2072_v19 = vmul.f32 1.442695, %v2034_v9  ;;  %v2070_v0 = vmul.f32 1.442695, %v2033_v10  ;;  %v2018_v24 = vand.u32 2147483647, %v5783_v12 }
 0x179   : > { %4819 = vpow2.f32 %v2068_v15  ;;  %v2074_v20 = vmul.f32 1.442695, %v2035_v16  ;;  %v2017_v25 = vand.u32 2147483647, %v5786_v17  ;;  %v2048_v55 = vsub.f32 0.0, %v2016_v22 }
 0x17a   : > { %4821 = vpow2.f32 %v2072_v19  ;;  %v2050_v28 = vsub.f32 0.0, %v2018_v24  ;;  %v2019_v31 = vand.u32 2147483647, %v5789_v18  ;;  %v1984_v59 = vmax.f32 %v5780_v11, 0.0 }
 0x17b   : > { %4823 = vpow2.f32 %v2070_v0  ;;  %v2049_v32 = vsub.f32 0.0, %v2017_v25  ;;  %v2100_v33 = vmul.f32 1.442695, %v2048_v55  ;;  %v1986_v3 = vmax.f32 %v5783_v12, 0.0 }
 0x17c   : > { %4825 = vpow2.f32 %v2074_v20  ;;  %v2104_v34 = vmul.f32 1.442695, %v2050_v28  ;;  %v2051_v35 = vsub.f32 0.0, %v2019_v31  ;;  %v1968_v5 = vmax.f32 %v5764_v57, 0.0 }
 0x17d   : > { %v2102_v36 = vmul.f32 1.442695, %v2049_v32  ;;  %4827 = vpow2.f32 %v2100_v33  ;;  %v1985_v8 = vmax.f32 %v5786_v17, 0.0  ;;  %v1970_v10 = vmax.f32 %v5767_v60, 0.0 }
 0x17e   : > { %v2106_v37 = vmul.f32 1.442695, %v2051_v35  ;;  %4829 = vpow2.f32 %v2104_v34  ;;  %v1987_v15 = vmax.f32 %v5789_v18, 0.0  ;;  %v1969_v19 = vmax.f32 %v5770_v61, 0.0  ;;  %v2254_v61 = vld [vmem:[%s6096_s5] sm:$0xff] }
 0x17f   : > { %4831 = vpow2.f32 %v2102_v36  ;;  %v1971_v57 = vmax.f32 %v5774_v2, 0.0  ;;  %2258 = vperm.xlu1 %4786, %v2254_v61   ;;  %v2255_v2 = vld [vmem:[%s6096_s5 + $0x8] sm:$0xff] }
 0x180   : > { %4833 = vpow2.f32 %v2106_v37 }
 0x183   : > { %v4820_v38 = vpop.eup %4819  ;;  %2263 = vperm.xlu1 %4786, %v2255_v2  }
 0x184   : > { %v4822_v41 = vpop.eup %4821  ;;  %v2128_v42 = vadd.f32 1.0, %v4820_v38 }
 0x185   : > { %v4824_v39 = vpop.eup %4823  ;;  %v2130_v43 = vadd.f32 1.0, %v4822_v41 }
 0x186   : > { %v4826_v44 = vpop.eup %4825  ;;  %v2129_v40 = vadd.f32 1.0, %v4824_v39  ;;  %4835 = vlog2.f32 %v2128_v42 }
 0x187   : > { %v2131_v47 = vadd.f32 1.0, %v4826_v44  ;;  %v4828_v23 = vpop.eup %4827  ;;  %4837 = vlog2.f32 %v2130_v43 }
 0x188   : > { %v4830_v48 = vpop.eup %4829  ;;  %4839 = vlog2.f32 %v2129_v40  ;;  %v2144_v49 = vadd.f32 1.0, %v4828_v23 }
 0x189   : > { %v4832_v50 = vpop.eup %4831  ;;  %4841 = vlog2.f32 %v2131_v47  ;;  %v2146_v45 = vadd.f32 1.0, %v4830_v48 }
 0x18a   : > { %v4834_v51 = vpop.eup %4833  ;;  %4843 = vlog2.f32 %v2144_v49  ;;  %v2145_v52 = vadd.f32 1.0, %v4832_v50 }
 0x18b   : > { %4845 = vlog2.f32 %v2146_v45  ;;  %v2147_v26 = vadd.f32 1.0, %v4834_v51 }
 0x18c   : > { %4847 = vlog2.f32 %v2145_v52 }
 0x18d   : > { %4849 = vlog2.f32 %v2147_v26 }
 0x190   : > { %v4836_v53 = vpop.eup %4835 }
 0x191   : > { %v4838_v54 = vpop.eup %4837  ;;  %v2165_v58 = vmul.f32 0.6931472, %v4836_v53 }
 0x192   : > { %v4840_v56 = vpop.eup %4839  ;;  %v2169_v63 = vmul.f32 0.6931472, %v4838_v54 }
 0x193   : > { %v4842_v46 = vpop.eup %4841  ;;  %v2167_v6 = vmul.f32 0.6931472, %v4840_v56  ;;  %v2224_v11 = vadd.f32 %v2165_v58, %v1968_v5 }
 0x194   : > { %v4844_v62 = vpop.eup %4843  ;;  %v2171_v13 = vmul.f32 0.6931472, %v4842_v46  ;;  %v2226_v20 = vadd.f32 %v2169_v63, %v1970_v10 }
 0x195   : > { %v4846_v4 = vpop.eup %4845  ;;  %v2197_v7 = vmul.f32 0.6931472, %v4844_v62  ;;  %v2225_v25 = vadd.f32 %v2167_v6, %v1969_v19 }
 0x196   : > { %v4848_v9 = vpop.eup %4847  ;;  %v2201_v14 = vmul.f32 0.6931472, %v4846_v4  ;;  %v2227_v28 = vadd.f32 %v2171_v13, %v1971_v57 }
 0x197   : > { %v4850_v16 = vpop.eup %4849  ;;  %v2240_v0 = vadd.f32 %v2197_v7, %v1984_v59  ;;  %v2199_v12 = vmul.f32 0.6931472, %v4848_v9 }
 0x198   : > { %v2242_v22 = vadd.f32 %v2201_v14, %v1986_v3  ;;  %v2203_v24 = vmul.f32 0.6931472, %v4850_v16 }
 0x199   : > { %v4673_v17 = vpack.c.bf16 %v2240_v0, %v2224_v11  ;;  %v2241_v55 = vadd.f32 %v2199_v12, %v1985_v8 }
 0x19a   : > { %v4677_v60 = vpack.c.bf16 %v2242_v22, %v2226_v20  ;;  %v2243_v31 = vadd.f32 %v2203_v24, %v1987_v15 }
 0x19b   : > { %v4671_v32 = vpack.c.bf16 %v2241_v55, %v2225_v25 }
 0x19c   : > { %v4675_v33 = vpack.c.bf16 %v2243_v31, %v2227_v28 }
 0x19d   : > { %4672 = vmatprep.subr.bf16.mxu0 %v4671_v32 }
 0x19e   : > { %4676 = vmatprep.subr.bf16.mxu1 %v4675_v33  ;;  %4674 = vmatpush1.bf16.msra.mxu0 %v4673_v17 }
 0x19f   : > { %4678 = vmatpush1.bf16.msra.mxu1 %v4677_v60 }
 0x1a1   : > { %3943 = vmatmul.mubr.msk.f32.vlgmr.msra.gmra.mrb[20].mxu0 %vm301_vm2, %v5744_v27 }
 0x1a2   : > { %3945 = vmatmul.mubr.msk.f32.vlgmr.msra.gmra.mrb[20].mxu1 %vm301_vm2, %v5744_v27  ;;  %2497 = vmatprep.mubr.f32.mxu0 %v4997_v1 }
 0x1a3   : > { %2574 = vmatprep.mubr.f32.mxu1 %v4997_v1 }
 0x1a5   : > { %3944 = vmatmul.mubr.msk.f32.gmra.mrb[22].mxu0 %vm301_vm2, %v5754_v29 }
 0x1a6   : > { %3946 = vmatmul.mubr.msk.f32.gmra.mrb[22].mxu1 %vm301_vm2, %v5754_v29  ;;  %2645 = vmatprep.mubr.f32.mxu0 %v4997_v1 }
 0x1a7   : > { %2722 = vmatprep.mubr.f32.mxu1 %v4997_v1 }
 0x1b0   : > { %v1722_v18 = vpop.f32.mrb[8].mxu0 }
 0x1b1   : > { %v5822_v34 = vadd.f32 %v1722_v18, %v5697_v21  ;;  %v1799_v35 = vpop.f32.mrb[8].mxu1  ;;  %v1724_v36 = vpop.f32.mrb[9].mxu0 }
 0x1b2   : > { %v5825_v37 = vadd.f32 %v1799_v35, %v5697_v21  ;;  %v5828_v38 = vadd.f32 %v1724_v36, %v5697_v21  ;;  %v1801_v41 = vpop.f32.mrb[9].mxu1 }
 0x1b3   : > { %v2004_v42 = vand.u32 2147483647, %v5822_v34  ;;  %v5832_v39 = vadd.f32 %v1801_v41, %v5697_v21 }
 0x1b4   : > { %v2006_v43 = vand.u32 2147483647, %v5825_v37  ;;  %v2005_v44 = vand.u32 2147483647, %v5828_v38  ;;  %v1728_v23 = vpop.f32.mrb[10].mxu0 }
 0x1b5   : > { %v2036_v40 = vsub.f32 0.0, %v2004_v42  ;;  %v2007_v47 = vand.u32 2147483647, %v5832_v39  ;;  %v1805_v48 = vpop.f32.mrb[10].mxu1  ;;  %v5838_v45 = vadd.f32 %v1728_v23, %v5712_v30  ;;  %v1730_v52 = vpop.f32.mrb[11].mxu0 }
 0x1b6   : > { %v2038_v49 = vsub.f32 0.0, %v2006_v43  ;;  %v2037_v50 = vsub.f32 0.0, %v2005_v44  ;;  %v5841_v51 = vadd.f32 %v1805_v48, %v5712_v30  ;;  %v1807_v26 = vpop.f32.mrb[11].mxu1  ;;  %v5844_v56 = vadd.f32 %v1730_v52, %v5712_v30 }
 0x1b7   : > { %v2076_v53 = vmul.f32 1.442695, %v2036_v40  ;;  %v2039_v54 = vsub.f32 0.0, %v2007_v47  ;;  %v5847_v46 = vadd.f32 %v1807_v26, %v5712_v30  ;;  %v2020_v63 = vand.u32 2147483647, %v5838_v45 }
 0x1b8   : > { %v2080_v58 = vmul.f32 1.442695, %v2038_v49  ;;  %v2078_v59 = vmul.f32 1.442695, %v2037_v50  ;;  %v2022_v3 = vand.u32 2147483647, %v5841_v51 }
 0x1b9   : > { %4851 = vpow2.f32 %v2076_v53  ;;  %v2082_v62 = vmul.f32 1.442695, %v2039_v54  ;;  %v2021_v4 = vand.u32 2147483647, %v5844_v56  ;;  %v2052_v5 = vsub.f32 0.0, %v2020_v63 }
 0x1ba   : > { %4853 = vpow2.f32 %v2080_v58  ;;  %v2054_v6 = vsub.f32 0.0, %v2022_v3  ;;  %v2023_v7 = vand.u32 2147483647, %v5847_v46  ;;  %v1988_v36 = vmax.f32 %v5838_v45, 0.0 }
 0x1bb   : > { %4855 = vpow2.f32 %v2078_v59  ;;  %v2053_v8 = vsub.f32 0.0, %v2021_v4  ;;  %v2108_v9 = vmul.f32 1.442695, %v2052_v5  ;;  %v1990_v43 = vmax.f32 %v5841_v51, 0.0 }
 0x1bc   : > { %4857 = vpow2.f32 %v2082_v62  ;;  %v2112_v10 = vmul.f32 1.442695, %v2054_v6  ;;  %v2055_v13 = vsub.f32 0.0, %v2023_v7  ;;  %v1972_v40 = vmax.f32 %v5822_v34, 0.0 }
 0x1bd   : > { %v2110_v14 = vmul.f32 1.442695, %v2053_v8  ;;  %4859 = vpow2.f32 %v2108_v9  ;;  %v1989_v48 = vmax.f32 %v5844_v56, 0.0  ;;  %v1974_v50 = vmax.f32 %v5825_v37, 0.0 }
 0x1be   : > { %v2114_v15 = vmul.f32 1.442695, %v2055_v13  ;;  %4861 = vpow2.f32 %v2112_v10  ;;  %v1991_v53 = vmax.f32 %v5847_v46, 0.0  ;;  %v1973_v58 = vmax.f32 %v5828_v38, 0.0 }
 0x1bf   : > { %4863 = vpow2.f32 %v2110_v14  ;;  %v1975_v34 = vmax.f32 %v5832_v39, 0.0 }
 0x1c0   : > { %4865 = vpow2.f32 %v2114_v15 }
 0x1c3   : > { %v4852_v16 = vpop.eup %4851 }
 0x1c4   : > { %v4854_v11 = vpop.eup %4853  ;;  %v2132_v19 = vadd.f32 1.0, %v4852_v16 }
 0x1c5   : > { %v4856_v0 = vpop.eup %4855  ;;  %v2134_v12 = vadd.f32 1.0, %v4854_v11 }
 0x1c6   : > { %v4858_v20 = vpop.eup %4857  ;;  %v2133_v57 = vadd.f32 1.0, %v4856_v0  ;;  %4867 = vlog2.f32 %v2132_v19 }
 0x1c7   : > { %v2135_v22 = vadd.f32 1.0, %v4858_v20  ;;  %v4860_v24 = vpop.eup %4859  ;;  %4869 = vlog2.f32 %v2134_v12 }
 0x1c8   : > { %v4862_v25 = vpop.eup %4861  ;;  %4871 = vlog2.f32 %v2133_v57  ;;  %v2148_v17 = vadd.f32 1.0, %v4860_v24 }
 0x1c9   : > { %v4864_v55 = vpop.eup %4863  ;;  %4873 = vlog2.f32 %v2135_v22  ;;  %v2150_v28 = vadd.f32 1.0, %v4862_v25 }
 0x1ca   : > { %v4866_v60 = vpop.eup %4865  ;;  %4875 = vlog2.f32 %v2148_v17  ;;  %v2149_v31 = vadd.f32 1.0, %v4864_v55 }
 0x1cb   : > { %4877 = vlog2.f32 %v2150_v28  ;;  %v2151_v32 = vadd.f32 1.0, %v4866_v60 }
 0x1cc   : > { %4879 = vlog2.f32 %v2149_v31 }
 0x1cd   : > { %4881 = vlog2.f32 %v2151_v32 }
 0x1d0   : > { %v4868_v33 = vpop.eup %4867 }
 0x1d1   : > { %v4870_v61 = vpop.eup %4869  ;;  %v2173_v35 = vmul.f32 0.6931472, %v4868_v33 }
 0x1d2   : > { %v4872_v2 = vpop.eup %4871  ;;  %v2177_v42 = vmul.f32 0.6931472, %v4870_v61 }
 0x1d3   : > { %v4874_v18 = vpop.eup %4873  ;;  %v2175_v47 = vmul.f32 0.6931472, %v4872_v2  ;;  %v2228_v45 = vadd.f32 %v2173_v35, %v1972_v40 }
 0x1d4   : > { %v4876_v41 = vpop.eup %4875  ;;  %v2179_v52 = vmul.f32 0.6931472, %v4874_v18  ;;  %v2230_v62 = vadd.f32 %v2177_v42, %v1974_v50 }
 0x1d5   : > { %v4878_v44 = vpop.eup %4877  ;;  %v2205_v23 = vmul.f32 0.6931472, %v4876_v41  ;;  %v2229_v4 = vadd.f32 %v2175_v47, %v1973_v58 }
 0x1d6   : > { %v4880_v49 = vpop.eup %4879  ;;  %v2209_v26 = vmul.f32 0.6931472, %v4878_v44  ;;  %v2231_v6 = vadd.f32 %v2179_v52, %v1975_v34 }
 0x1d7   : > { %v4882_v54 = vpop.eup %4881  ;;  %v2244_v59 = vadd.f32 %v2205_v23, %v1988_v36  ;;  %v2207_v51 = vmul.f32 0.6931472, %v4880_v49 }
 0x1d8   : > { %v2246_v63 = vadd.f32 %v2209_v26, %v1990_v43  ;;  %v2211_v3 = vmul.f32 0.6931472, %v4882_v54 }
 0x1d9   : > { %v4681_v56 = vpack.c.bf16 %v2244_v59, %v2228_v45  ;;  %v2245_v5 = vadd.f32 %v2207_v51, %v1989_v48 }
 0x1da   : > { %v4685_v37 = vpack.c.bf16 %v2246_v63, %v2230_v62  ;;  %v2247_v7 = vadd.f32 %v2211_v3, %v1991_v53 }
 0x1db   : > { %v4679_v8 = vpack.c.bf16 %v2245_v5, %v2229_v4 }
 0x1dc   : > { %v4683_v9 = vpack.c.bf16 %v2247_v7, %v2231_v6 }
 0x1dd   : > { %4680 = vmatprep.subr.bf16.mxu0 %v4679_v8 }
 0x1de   : > { %4684 = vmatprep.subr.bf16.mxu1 %v4683_v9  ;;  %4682 = vmatpush1.bf16.msra.mxu0 %v4681_v56 }
 0x1df   : > { %4686 = vmatpush1.bf16.msra.mxu1 %v4685_v37 }
 0x1e1   : > { %3947 = vmatmul.mubr.msk.f32.vlgmr.msra.gmra.mrb[24].mxu0 %vm301_vm2, %v5744_v27 }
 0x1e2   : > { %3949 = vmatmul.mubr.msk.f32.vlgmr.msra.gmra.mrb[24].mxu1 %vm301_vm2, %v5744_v27  ;;  %2651 = vmatprep.mubr.f32.mxu0 %v4997_v1 }
 0x1e3   : > { %2728 = vmatprep.mubr.f32.mxu1 %v4997_v1 }
 0x1e5   : > { %3948 = vmatmul.mubr.msk.f32.gmra.mrb[26].mxu0 %vm301_vm2, %v5754_v29 }
 0x1e6   : > { %3950 = vmatmul.mubr.msk.f32.gmra.mrb[26].mxu1 %vm301_vm2, %v5754_v29  ;;  %2799 = vmatprep.mubr.f32.mxu0 %v4997_v1 }
 0x1e7   : > { %2876 = vmatprep.mubr.f32.mxu1 %v4997_v1 }
 0x1f0   : > { %v1876_v38 = vpop.f32.mrb[12].mxu0 }
 0x1f1   : > { %v5874_v39 = vadd.f32 %v1876_v38, %v5697_v21  ;;  %v1953_v46 = vpop.f32.mrb[12].mxu1  ;;  %v1878_v10 = vpop.f32.mrb[13].mxu0 }
 0x1f2   : > { %v5877_v13 = vadd.f32 %v1953_v46, %v5697_v21  ;;  %v5880_v14 = vadd.f32 %v1878_v10, %v5697_v21  ;;  %v1955_v15 = vpop.f32.mrb[13].mxu1 }
 0x1f3   : > { %v2008_v16 = vand.u32 2147483647, %v5874_v39  ;;  %v5884_v11 = vadd.f32 %v1955_v15, %v5697_v21  ;;  %v1976_v46 = vmax.f32 %v5874_v39, 0.0 }
 0x1f4   : > { %v2010_v19 = vand.u32 2147483647, %v5877_v13  ;;  %v2009_v0 = vand.u32 2147483647, %v5880_v14  ;;  %v1882_v57 = vpop.f32.mrb[14].mxu0  ;;  %v1978_v10 = vmax.f32 %v5877_v13, 0.0 }
 0x1f5   : > { %v2040_v12 = vsub.f32 0.0, %v2008_v16  ;;  %v2011_v20 = vand.u32 2147483647, %v5884_v11  ;;  %v1959_v22 = vpop.f32.mrb[14].mxu1  ;;  %v5890_v17 = vadd.f32 %v1882_v57, %v5712_v30  ;;  %v1884_v28 = vpop.f32.mrb[15].mxu0 }
 0x1f6   : > { %v2042_v24 = vsub.f32 0.0, %v2010_v19  ;;  %v2041_v25 = vsub.f32 0.0, %v2009_v0  ;;  %v5893_v55 = vadd.f32 %v1959_v22, %v5712_v30  ;;  %v1961_v21 = vpop.f32.mrb[15].mxu1  ;;  %v5896_v32 = vadd.f32 %v1884_v28, %v5712_v30 }
 0x1f7   : > { %v2084_v60 = vmul.f32 1.442695, %v2040_v12  ;;  %v2043_v31 = vsub.f32 0.0, %v2011_v20  ;;  %v5899_v33 = vadd.f32 %v1961_v21, %v5712_v30  ;;  %v2024_v35 = vand.u32 2147483647, %v5890_v17 }
 0x1f8   : > { %v2088_v61 = vmul.f32 1.442695, %v2042_v24  ;;  %v2086_v2 = vmul.f32 1.442695, %v2041_v25  ;;  %v2026_v36 = vand.u32 2147483647, %v5893_v55 }
 0x1f9   : > { %4883 = vpow2.f32 %v2084_v60  ;;  %v2090_v18 = vmul.f32 1.442695, %v2043_v31  ;;  %v2025_v41 = vand.u32 2147483647, %v5896_v32  ;;  %v2056_v42 = vsub.f32 0.0, %v2024_v35 }
 0x1fa   : > { %4885 = vpow2.f32 %v2088_v61  ;;  %v2058_v43 = vsub.f32 0.0, %v2026_v36  ;;  %v2027_v44 = vand.u32 2147483647, %v5899_v33  ;;  %v1977_v19 = vmax.f32 %v5880_v14, 0.0 }
 0x1fb   : > { %4887 = vpow2.f32 %v2086_v2  ;;  %v2057_v40 = vsub.f32 0.0, %v2025_v41  ;;  %v2116_v30 = vmul.f32 1.442695, %v2056_v42  ;;  %v1992_v12 = vmax.f32 %v5890_v17, 0.0 }
 0x1fc   : > { %4889 = vpow2.f32 %v2090_v18  ;;  %v2120_v47 = vmul.f32 1.442695, %v2058_v43  ;;  %v2059_v23 = vsub.f32 0.0, %v2027_v44  ;;  %v1979_v22 = vmax.f32 %v5884_v11, 0.0 }
 0x1fd   : > { %v2118_v48 = vmul.f32 1.442695, %v2057_v40  ;;  %4891 = vpow2.f32 %v2116_v30  ;;  %v1994_v25 = vmax.f32 %v5893_v55, 0.0  ;;  %v1993_v13 = vmax.f32 %v5896_v32, 0.0 }
 0x1fe   : > { %v2122_v49 = vmul.f32 1.442695, %v2059_v23  ;;  %4893 = vpow2.f32 %v2120_v47  ;;  %v1995_v14 = vmax.f32 %v5899_v33, 0.0  ;;  %v5923_v32 = vpop.permute.xlu1 %2258 }
 0x1ff   : > { %4895 = vpow2.f32 %v2118_v48 }
 0x200   : > { %4897 = vpow2.f32 %v2122_v49 }
 0x202   : > { %v5925_v47 = vpop.permute.xlu1 %2263 }
 0x203   : > { %v4884_v50 = vpop.eup %4883 }
 0x204   : > { %v4886_v52 = vpop.eup %4885  ;;  %v2136_v26 = vadd.f32 1.0, %v4884_v50 }
 0x205   : > { %v4888_v53 = vpop.eup %4887  ;;  %v2138_v54 = vadd.f32 1.0, %v4886_v52 }
 0x206   : > { %v4890_v45 = vpop.eup %4889  ;;  %v2137_v58 = vadd.f32 1.0, %v4888_v53  ;;  %4899 = vlog2.f32 %v2136_v26 }
 0x207   : > { %v2139_v59 = vadd.f32 1.0, %v4890_v45  ;;  %v4892_v51 = vpop.eup %4891  ;;  %4901 = vlog2.f32 %v2138_v54 }
 0x208   : > { %v4894_v62 = vpop.eup %4893  ;;  %4903 = vlog2.f32 %v2137_v58  ;;  %v2152_v34 = vadd.f32 1.0, %v4892_v51 }
 0x209   : > { %v4896_v63 = vpop.eup %4895  ;;  %4905 = vlog2.f32 %v2139_v59  ;;  %v2154_v3 = vadd.f32 1.0, %v4894_v62 }
 0x20a   : > { %v4898_v4 = vpop.eup %4897  ;;  %4907 = vlog2.f32 %v2152_v34  ;;  %v2153_v56 = vadd.f32 1.0, %v4896_v63 }
 0x20b   : > { %4909 = vlog2.f32 %v2154_v3  ;;  %v2155_v5 = vadd.f32 1.0, %v4898_v4 }
 0x20c   : > { %4911 = vlog2.f32 %v2153_v56 }
 0x20d   : > { %4913 = vlog2.f32 %v2155_v5  ;;  %v2889_v5 = vld [vmem:[%s5943_s30] sm:$0xff] }
 0x210   : > { %v4900_v6 = vpop.eup %4899 }
 0x211   : > { %v4902_v37 = vpop.eup %4901  ;;  %v2181_v9 = vmul.f32 0.6931472, %v4900_v6 }
 0x212   : > { %v4904_v7 = vpop.eup %4903  ;;  %v2185_v15 = vmul.f32 0.6931472, %v4902_v37 }
 0x213   : > { %v4906_v8 = vpop.eup %4905  ;;  %v2183_v0 = vmul.f32 0.6931472, %v4904_v7  ;;  %v2232_v60 = vadd.f32 %v2181_v9, %v1976_v46 }
 0x214   : > { %v4908_v38 = vpop.eup %4907  ;;  %v2187_v24 = vmul.f32 0.6931472, %v4906_v8  ;;  %v2234_v61 = vadd.f32 %v2185_v15, %v1978_v10  ;;  %v4998_v10 = vmov 1.0  }
 0x215   : > { %v4910_v16 = vpop.eup %4909  ;;  %v2213_v20 = vmul.f32 0.6931472, %v4908_v38  ;;  %v2233_v17 = vadd.f32 %v2183_v0, %v1977_v19  ;;  %v5965_v0 = vld [vmem:[%s5943_s30 + $0x8] sm:$0xff] }
 0x216   : > { %v4912_v57 = vpop.eup %4911  ;;  %v2217_v28 = vmul.f32 0.6931472, %v4910_v16  ;;  %v2235_v41 = vadd.f32 %v2187_v24, %v1979_v22 }
 0x217   : > { %v4914_v21 = vpop.eup %4913  ;;  %v2248_v39 = vadd.f32 %v2213_v20, %v1992_v12  ;;  %v2215_v31 = vmul.f32 0.6931472, %v4912_v57 }
 0x218   : > { %v2250_v2 = vadd.f32 %v2217_v28, %v1994_v25  ;;  %v2219_v18 = vmul.f32 0.6931472, %v4914_v21 }
 0x219   : > { %v4689_v35 = vpack.c.bf16 %v2248_v39, %v2232_v60  ;;  %v2249_v36 = vadd.f32 %v2215_v31, %v1993_v13 }
 0x21a   : > { %v4693_v11 = vpack.c.bf16 %v2250_v2, %v2234_v61  ;;  %v2251_v42 = vadd.f32 %v2219_v18, %v1995_v14 }
 0x21b   : > { %v4687_v43 = vpack.c.bf16 %v2249_v36, %v2233_v17 }
 0x21c   : > { %v4691_v55 = vpack.c.bf16 %v2251_v42, %v2235_v41 }
 0x21d   : > { %4688 = vmatprep.subr.bf16.mxu0 %v4687_v43 }
 0x21e   : > { %4692 = vmatprep.subr.bf16.mxu1 %v4691_v55  ;;  %4690 = vmatpush1.bf16.msra.mxu0 %v4689_v35 }
 0x21f   : > { %4694 = vmatpush1.bf16.msra.mxu1 %v4693_v11 }
 0x221   : > { %3951 = vmatmul.mubr.msk.f32.vlgmr.msra.gmra.mrb[28].mxu0 %vm301_vm2, %v5744_v27 }
 0x222   : > { %3953 = vmatmul.mubr.msk.f32.vlgmr.msra.gmra.mrb[28].mxu1 %vm301_vm2, %v5744_v27  ;;  %2805 = vmatprep.mubr.f32.mxu0 %v4997_v1  ;;  %v2891_v27 = vlaneseq }
 0x223   : > { %2882 = vmatprep.mubr.f32.mxu1 %v4997_v1 }
 0x224   : > { %v5931_v52 = vshrl.u32 %v2891_v27, 7 }
 0x225   : > { %3952 = vmatmul.mubr.msk.f32.gmra.mrb[30].mxu0 %vm301_vm2, %v5754_v29 }
 0x226   : > { %3954 = vmatmul.mubr.msk.f32.gmra.mrb[30].mxu1 %vm301_vm2, %v5754_v29  ;;  %v2899_v51 = vsub.s32 1, %v5931_v52  ;;  %v2907_v62 = vsub.s32 3, %v5931_v52  ;;  %v2895_v3 = vsub.s32 0, %v5931_v52  ;;  %v2903_v6 = vsub.s32 2, %v5931_v52 }
 0x227   : > { %v2915_v9 = vsub.s32 5, %v5931_v52  ;;  %v2923_v38 = vsub.s32 7, %v5931_v52  ;;  %v2911_v42 = vsub.s32 4, %v5931_v52 }
 0x228   : > { %v2900_v7 = vrot.slane %v2889_v5, %v2899_v51  ;;  %v2908_v8 = vrot.slane %v2889_v5, %v2907_v62  ;;  %v2896_v46 = vrot.slane %v2889_v5, %v2895_v3  ;;  %v2904_v15 = vrot.slane %v2889_v5, %v2903_v6 }
 0x229   : > { %v2916_v16 = vrot.slane %v2889_v5, %v2915_v9  ;;  %v2924_v19 = vrot.slane %v2889_v5, %v2923_v38  ;;  %v2932_v12 = vrot.slane %v5965_v0, %v2899_v51  ;;  %v5969_v20 = vrot.slane %v5965_v0, %v2895_v3 }
 0x22a   : > { %vm2958_vm3 = vcmp.eq.s32.totalorder %v2900_v7, %v5931_v52  ;;  %vm2960_vm4 = vcmp.eq.s32.totalorder %v2908_v8, %v5931_v52  ;;  %vm2957_vm5 = vcmp.eq.s32.totalorder %v2896_v46, %v5931_v52  ;;  %vm2959_vm6 = vcmp.eq.s32.totalorder %v2904_v15, %v5931_v52 }
 0x22b   : > { %3971 = vmatprep.mubr.msk.f32.mxu0 %vm2958_vm3, %v4998_v10  ;;  %3973 = vmatprep.mubr.msk.f32.mxu1 %vm2960_vm4, %v4998_v10  ;;  %vm2962_vm7 = vcmp.eq.s32.totalorder %v2916_v16, %v5931_v52  ;;  %vm2964_vm8 = vcmp.eq.s32.totalorder %v2924_v19, %v5931_v52  ;;  %v2940_v22 = vrot.slane %v5965_v0, %v2907_v62 }
 0x22c   : > { %v5973_v28 = vrot.slane %v5965_v0, %v2903_v6  ;;  %v2948_v27 = vrot.slane %v5965_v0, %v2915_v9  ;;  %vm2966_vm11 = vcmp.eq.s32.totalorder %v2932_v12, %v5931_v52  ;;  %v2956_v7 = vrot.slane %v5965_v0, %v2923_v38 }
 0x22d   : > { %vm2968_vm12 = vcmp.eq.s32.totalorder %v2940_v22, %v5931_v52  ;;  %vm2965_vm13 = vcmp.eq.s32.totalorder %v5969_v20, %v5931_v52 }
 0x22e   : > { %vm2967_vm14 = vcmp.eq.s32.totalorder %v5973_v28, %v5931_v52  ;;  %vm2970_vm15 = vcmp.eq.s32.totalorder %v2948_v27, %v5931_v52  ;;  %vm2972_vm0 = vcmp.eq.s32.totalorder %v2956_v7, %v5931_v52 }
 0x234   : > { %v2339_v33 = vpop.f32.mrb[16].mxu0 }
 0x235   : > { %v2416_v44 = vpop.f32.mrb[16].mxu1  ;;  %v2341_v40 = vpop.f32.mrb[17].mxu0  ;;  %v2340_v23 = vadd.f32 %v2339_v33, %v5923_v32  ;;  %v2919_v33 = vsub.s32 6, %v5931_v52 }
 0x236   : > { %v2418_v30 = vpop.f32.mrb[17].mxu1  ;;  %v2417_v48 = vadd.f32 %v2416_v44, %v5923_v32  ;;  %v2342_v49 = vadd.f32 %v2341_v40, %v5923_v32  ;;  %v2912_v40 = vrot.slane %v2889_v5, %v2911_v42 }
 0x237   : > { %v2419_v29 = vadd.f32 %v2418_v30, %v5923_v32  ;;  %v2920_v30 = vrot.slane %v2889_v5, %v2919_v33 }
 0x238   : > { %v2345_v50 = vpop.f32.mrb[18].mxu0  ;;  %vm2961_vm9 = vcmp.eq.s32.totalorder %v2912_v40, %v5931_v52 }
 0x239   : > { %v2422_v26 = vpop.f32.mrb[18].mxu1  ;;  %v2347_v53 = vpop.f32.mrb[19].mxu0  ;;  %v2346_v54 = vadd.f32 %v2345_v50, %v5925_v47  ;;  %vm2963_vm10 = vcmp.eq.s32.totalorder %v2920_v30, %v5931_v52 }
 0x23a   : > { %v2348_v45 = vadd.f32 %v2347_v53, %v5925_v47  ;;  %v2424_v58 = vpop.f32.mrb[19].mxu1  ;;  %v2423_v59 = vadd.f32 %v2422_v26, %v5925_v47 }
 0x23b   : > { %v2425_v34 = vadd.f32 %v2424_v58, %v5925_v47  ;;  %v4697_v63 = vpack.c.bf16 %v2346_v54, %v2340_v23  ;;  %v5989_v23 = vrot.slane %v5965_v0, %v2911_v42 }
 0x23c   : > { %v4695_v4 = vpack.c.bf16 %v2348_v45, %v2342_v49  ;;  %v4701_v56 = vpack.c.bf16 %v2423_v59, %v2417_v48 }
 0x23d   : > { %v4699_v37 = vpack.c.bf16 %v2425_v34, %v2419_v29  ;;  %vm2969_vm1 = vcmp.eq.s32.totalorder %v5989_v23, %v5931_v52 }
 0x23e   : > { %4696 = vmatprep.subr.bf16.mxu0 %v4695_v4 }
 0x23f   : > { %4700 = vmatprep.subr.bf16.mxu1 %v4699_v37  ;;  %4698 = vmatpush1.bf16.xpose.msra.mxu0 %v4697_v63 }
 0x240   : > { %4702 = vmatpush1.bf16.xpose.msra.mxu1 %v4701_v56 }
 0x246   : > { %3972 = vmatmul.mubr.msk.f32.vlgmr.msra.gmra.mrb[32].mxu0 %vm2957_vm5, %v4998_v10 }
 0x247   : > { %3974 = vmatmul.mubr.msk.f32.vlgmr.msra.gmra.mrb[32].mxu1 %vm2959_vm6, %v4998_v10  ;;  %3975 = vmatprep.mubr.msk.f32.mxu0 %vm2962_vm7, %v4998_v10 }
 0x248   : > { %3977 = vmatprep.mubr.msk.f32.mxu1 %vm2964_vm8, %v4998_v10 }
 0x274   : > { %v2493_v57 = vpop.f32.mrb[20].mxu0 }
 0x275   : > { %v2570_v24 = vpop.f32.mrb[20].mxu1  ;;  %v2495_v25 = vpop.f32.mrb[21].mxu0  ;;  %v2494_v60 = vadd.f32 %v2493_v57, %v5923_v32 }
 0x276   : > { %v2572_v21 = vpop.f32.mrb[21].mxu1  ;;  %v2571_v39 = vadd.f32 %v2570_v24, %v5923_v32  ;;  %v2496_v13 = vadd.f32 %v2495_v25, %v5923_v32 }
 0x277   : > { %v2573_v61 = vadd.f32 %v2572_v21, %v5923_v32 }
 0x278   : > { %v2499_v31 = vpop.f32.mrb[22].mxu0 }
 0x279   : > { %v2500_v2 = vadd.f32 %v2499_v31, %v5925_v47  ;;  %v2576_v14 = vpop.f32.mrb[22].mxu1  ;;  %v2501_v18 = vpop.f32.mrb[23].mxu0 }
 0x27a   : > { %v2577_v17 = vadd.f32 %v2576_v14, %v5925_v47  ;;  %v2502_v35 = vadd.f32 %v2501_v18, %v5925_v47  ;;  %v2578_v36 = vpop.f32.mrb[23].mxu1 }
 0x27b   : > { %v4705_v41 = vpack.c.bf16 %v2500_v2, %v2494_v60  ;;  %v2579_v11 = vadd.f32 %v2578_v36, %v5925_v47  ;;  %v2952_v2 = vrot.slane %v5965_v0, %v2919_v33 }
 0x27c   : > { %v4709_v43 = vpack.c.bf16 %v2577_v17, %v2571_v39  ;;  %v4703_v55 = vpack.c.bf16 %v2502_v35, %v2496_v13 }
 0x27d   : > { %v4707_v44 = vpack.c.bf16 %v2579_v11, %v2573_v61  ;;  %vm2971_vm3 = vcmp.eq.s32.totalorder %v2952_v2, %v5931_v52 }
 0x27e   : > { %4704 = vmatprep.subr.bf16.mxu0 %v4703_v55 }
 0x27f   : > { %4708 = vmatprep.subr.bf16.mxu1 %v4707_v44  ;;  %4706 = vmatpush1.bf16.xpose.msra.mxu0 %v4705_v41 }
 0x280   : > { %4710 = vmatpush1.bf16.xpose.msra.mxu1 %v4709_v43 }
 0x286   : > { %3976 = vmatmul.mubr.msk.f32.vlgmr.msra.gmra.mrb[34].mxu0 %vm2961_vm9, %v4998_v10 }
 0x287   : > { %3978 = vmatmul.mubr.msk.f32.vlgmr.msra.gmra.mrb[34].mxu1 %vm2963_vm10, %v4998_v10  ;;  %3979 = vmatprep.mubr.msk.f32.mxu0 %vm2966_vm11, %v4998_v10 }
 0x288   : > { %3981 = vmatprep.mubr.msk.f32.mxu1 %vm2968_vm12, %v4998_v10 }
 0x2b4   : > { %v2647_v48 = vpop.f32.mrb[24].mxu0 }
 0x2b5   : > { %v2724_v49 = vpop.f32.mrb[24].mxu1  ;;  %v2649_v50 = vpop.f32.mrb[25].mxu0  ;;  %v2648_v26 = vadd.f32 %v2647_v48, %v5923_v32  ;;  %v3005_v48 = vld [vmem:[%s281_s12] sm:$0xff] }
 0x2b6   : > { %v2726_v29 = vpop.f32.mrb[25].mxu1  ;;  %v2725_v53 = vadd.f32 %v2724_v49, %v5923_v32  ;;  %v2650_v54 = vadd.f32 %v2649_v50, %v5923_v32 }
 0x2b7   : > { %v2727_v58 = vadd.f32 %v2726_v29, %v5923_v32 }
 0x2b8   : > { %v2653_v45 = vpop.f32.mrb[26].mxu0 }
 0x2b9   : > { %v2654_v59 = vadd.f32 %v2653_v45, %v5925_v47  ;;  %v2730_v51 = vpop.f32.mrb[26].mxu1  ;;  %v2655_v62 = vpop.f32.mrb[27].mxu0 }
 0x2ba   : > { %v2731_v34 = vadd.f32 %v2730_v51, %v5925_v47  ;;  %v2656_v63 = vadd.f32 %v2655_v62, %v5925_v47  ;;  %v2732_v3 = vpop.f32.mrb[27].mxu1 }
 0x2bb   : > { %v4713_v4 = vpack.c.bf16 %v2654_v59, %v2648_v26  ;;  %v2733_v56 = vadd.f32 %v2732_v3, %v5925_v47 }
 0x2bc   : > { %v4717_v5 = vpack.c.bf16 %v2731_v34, %v2725_v53  ;;  %v4711_v6 = vpack.c.bf16 %v2656_v63, %v2650_v54 }
 0x2bd   : > { %v4715_v37 = vpack.c.bf16 %v2733_v56, %v2727_v58 }
 0x2be   : > { %4712 = vmatprep.subr.bf16.mxu0 %v4711_v6 }
 0x2bf   : > { %4716 = vmatprep.subr.bf16.mxu1 %v4715_v37  ;;  %4714 = vmatpush1.bf16.xpose.msra.mxu0 %v4713_v4 }
 0x2c0   : > { %4718 = vmatpush1.bf16.xpose.msra.mxu1 %v4717_v5 }
 0x2c6   : > { %3980 = vmatmul.mubr.msk.f32.vlgmr.msra.gmra.mrb[36].mxu0 %vm2965_vm13, %v4998_v10 }
 0x2c7   : > { %3982 = vmatmul.mubr.msk.f32.vlgmr.msra.gmra.mrb[36].mxu1 %vm2967_vm14, %v4998_v10  ;;  %3983 = vmatprep.mubr.msk.f32.mxu0 %vm2970_vm15, %v4998_v10 }
 0x2c8   : > { %3985 = vmatprep.mubr.msk.f32.mxu1 %vm2972_vm0, %v4998_v10 }
 0x2f4   : > { %v2801_v8 = vpop.f32.mrb[28].mxu0 }
 0x2f5   : > { %v2878_v9 = vpop.f32.mrb[28].mxu1  ;;  %v2803_v38 = vpop.f32.mrb[29].mxu0  ;;  %v2802_v16 = vadd.f32 %v2801_v8, %v5923_v32 }
 0x2f6   : > { %v2880_v46 = vpop.f32.mrb[29].mxu1  ;;  %v2879_v57 = vadd.f32 %v2878_v9, %v5923_v32  ;;  %v2804_v22 = vadd.f32 %v2803_v38, %v5923_v32 }
 0x2f7   : > { %v2881_v21 = vadd.f32 %v2880_v46, %v5923_v32 }
 0x2f8   : > { %v2807_v15 = vpop.f32.mrb[30].mxu0 }
 0x2f9   : > { %v2808_v19 = vadd.f32 %v2807_v15, %v5925_v47  ;;  %v2884_v12 = vpop.f32.mrb[30].mxu1  ;;  %v2809_v20 = vpop.f32.mrb[31].mxu0 }
 0x2fa   : > { %v2885_v24 = vadd.f32 %v2884_v12, %v5925_v47  ;;  %v2810_v25 = vadd.f32 %v2809_v20, %v5925_v47  ;;  %v2886_v28 = vpop.f32.mrb[31].mxu1 }
 0x2fb   : > { %v4721_v60 = vpack.c.bf16 %v2808_v19, %v2802_v16  ;;  %v2887_v39 = vadd.f32 %v2886_v28, %v5925_v47 }
 0x2fc   : > { %v4725_v13 = vpack.c.bf16 %v2885_v24, %v2879_v57  ;;  %v4719_v31 = vpack.c.bf16 %v2810_v25, %v2804_v22 }
 0x2fd   : > { %v4723_v61 = vpack.c.bf16 %v2887_v39, %v2881_v21 }
 0x2fe   : > { %4720 = vmatprep.subr.bf16.mxu0 %v4719_v31 }
 0x2ff   : > { %4724 = vmatprep.subr.bf16.mxu1 %v4723_v61  ;;  %4722 = vmatpush1.bf16.xpose.msra.mxu0 %v4721_v60 }
 0x300   : > { %4726 = vmatpush1.bf16.xpose.msra.mxu1 %v4725_v13 }
 0x306   : > { %3984 = vmatmul.mubr.msk.f32.vlgmr.msra.gmra.mrb[38].mxu0 %vm2969_vm1, %v4998_v10 }
 0x307   : > { %3986 = vmatmul.mubr.msk.f32.vlgmr.msra.gmra.mrb[38].mxu1 %vm2971_vm3, %v4998_v10 }
 0x319   : > { %v3072_v32 = vpop.f32.mrb[32].mxu0 }
 0x31a   : > { %v3074_v47 = vpop.f32.mrb[33].mxu0  ;;  %v3142_v14 = vpop.f32.mrb[32].mxu1 }
 0x31b   : > { %v3143_v18 = vadd.f32 %v3142_v14, %v3072_v32  ;;  %v3144_v17 = vpop.f32.mrb[33].mxu1 }
 0x359   : > { %v3212_v0 = vpop.f32.mrb[34].mxu0 }
 0x35a   : > { %v3213_v35 = vadd.f32 %v3212_v0, %v3143_v18  ;;  %v3282_v36 = vpop.f32.mrb[34].mxu1  ;;  %v3214_v52 = vpop.f32.mrb[35].mxu0 }
 0x35b   : > { %v3284_v41 = vpop.f32.mrb[35].mxu1 }
 0x35c   : > { %v3283_v11 = vadd.f32 %v3282_v36, %v3213_v35 }
 0x399   : > { %v3352_v42 = vpop.f32.mrb[36].mxu0 }
 0x39a   : > { %v3353_v10 = vadd.f32 %v3352_v42, %v3283_v11  ;;  %v3422_v43 = vpop.f32.mrb[36].mxu1  ;;  %v3354_v55 = vpop.f32.mrb[37].mxu0 }
 0x39b   : > { %v3424_v33 = vpop.f32.mrb[37].mxu1 }
 0x39c   : > { %v3423_v44 = vadd.f32 %v3422_v43, %v3353_v10 }
 0x3d9   : > { %v3492_v40 = vpop.f32.mrb[38].mxu0 }
 0x3da   : > { %v3493_v30 = vadd.f32 %v3492_v40, %v3423_v44  ;;  %v3562_v27 = vpop.f32.mrb[38].mxu1  ;;  %v3494_v23 = vpop.f32.mrb[39].mxu0 }
 0x3db   : > { %v3564_v1 = vpop.f32.mrb[39].mxu1 }
 0x3dc   : > { %v3563_v49 = vadd.f32 %v3562_v27, %v3493_v30 }
 0x3de   : > { %v3566_v50 = vadd.f32 %v3563_v49, %v3005_v48 }
 0x3e0   : > { %3567 = vst.msk [vmem:[%s281_s12] sm:$0xff] %vm301_vm2, %v3566_v50 }
 0x3e1   : > { %4929 = shalt.err (!%p4926_p6)
}
 0x3e2   : > { %s4930_s28 = scalar_lea.hbm %s6043_s17, 128  ;;  %s4934_s11 = scalar_lea.hbm %s6097_s6, 256 }
 0x3e3   : > { %p4931_p7 = scmp.ne.s32.totalorder %s6043_s17, %s4930_s28  ;;  %p4935_p11 = scmp.lt.u32.totalorder %s6043_s17, %s6097_s6 }
 0x3e4   : > { %p4936_p12 = scmp.lt.u32.totalorder %s4934_s11, %s4930_s28  ;;  %p4938_p0 = scmp.lt.u32.totalorder %s4930_s28, %s6043_s17 }
 0x3e5   : > { %p4932_p9 = pnand %p4931_p7, %p5075_p4 }
 0x3e6   : > { %p4937_p13 = por %p4936_p12, %p4935_p11 }
 0x3e7   : > { %p4933_p10 = pneg %p4932_p9 }
 0x3e8   : > { %p4939_p1 = por %p4938_p0, %p4937_p13 }
 0x3ea   : > { %p4940_p2 = pnand %p4939_p1, %p4933_p10 }
 0x3ec   : > { %4943 = shalt.err (!%p4940_p2)
}
 0x3ed   : > { %4727 = dma.vmem_to_hbm [thread:$0]  (%p5075_p4), %s6045_s14, 128, %s6043_s17, %s3569_s18  }
 0x3ee PF: > { %p4733_p3 = scmp.ge.s32.totalorder %s4994_s26, 2  ;;  %s3594_s15 = sand.u32 1, %s4974_s21  }
 0x3ef   : > { %s3595_s16 = scalar_lea.sflag [#allocation3], %s3594_s15 }
 0x3f0   : > { %p4730_p5 = pnand %p4733_p3, %p5082_p8 }
 0x3f2   : > { %4969 = dma.done.wait (!%p4730_p5), %s3595_s16, 128  }
 0x3f3   : > { %4971 = vsyncadd (!%p4730_p5), %s3595_s16, 4294967168  ;;  %s19_s26 = sadd.s32 1, %s4994_s26   ;;  %s6102_s21 = smov %s4978_s22 }
 0x3f4   : > { %p16_p6 = scmp.ge.s32.totalorder %s19_s26, 4   ;;  %s6103_s22 = smov %s4982_s23 }
 0x3f5   : > { %s6104_s23 = smov %s5088_s10  ;;  %s6105_s24 = smov %s4990_s25 }
 0x3f6   : > { %s6106_s25 = smov %s6108_s29  ;;  %18 = sbr.rel (!%p16_p6) target bundleno = 4 (0x4), region = 86 }
 0x3fd   :  { %3600 = vsyncpa [#allocation3], 1 }
 0x3fe   :  { %3602 = vsyncpa [#allocation3 + $0x1], 1 }

</bundles_post_ra>
